<compile_context>
chip_gen: v7x
topology: tpu7x:2x2x1
jax: 0.10.0
libtpu: 0.0.40
codegen_flags: <defaults>
</compile_context>

<pallas_src>
import jax
import jax.numpy as jnp
from jax.experimental import pallas as pl
from jax.experimental.pallas import tpu as pltpu

IMAGE_DIM = 28 * 28 * 1   # 784
HIDDEN = 128
OUT = 1
MAX_TB = 1024             # batch-tile cap (keeps x double-buffer small on v7x)


def _round_up(x, m):
    return ((x + m - 1) // m) * m


def discriminator_kernel(x_ref, w1_ref, b1_ref, w2_ref, b2_ref, o_ref):
    # x_ref:  [TB, 784]   w1_ref: [784, 128]   b1_ref: [1, 128]
    # w2_ref: [1, 128]    b2_ref: [1, 1]       o_ref:  [1, TB]  (lane-dense row)
    x = x_ref[...]

    # Linear(784 -> 128) on the MXU, f32 accumulate.
    h = jnp.dot(x, w1_ref[...], preferred_element_type=jnp.float32) + b1_ref[...]

    # LeakyReLU(0.1): slope < 1 so max(h, 0.1*h) is exact.
    h = jnp.maximum(h, 0.1 * h)

    # Linear(128 -> 1) as a VPU multiply + lane reduce (no 1-column MXU matmul).
    z = jnp.sum(h * w2_ref[...], axis=-1)          # (TB,)
    z = z[None, :] + b2_ref[...]                   # (1, TB), lane-dense

    # Sigmoid (exact divide to stay within 1e-5 of the reference).
    o_ref[...] = (1.0 / (1.0 + jnp.exp(-z))).astype(o_ref.dtype)


def discriminator_forward(x, w1, b1, w2, b2):
    """x: [B, 784], w1: [784, 128], b1: [1, 128], w2: [128, 1], b2: [1, 1] -> [B, 1]."""
    B = x.shape[0]
    TB = min(MAX_TB, _round_up(B, 128))
    B_pad = _round_up(B, TB)
    if B_pad != B:
        x = jnp.pad(x, ((0, B_pad - B), (0, 0)))
    num_tiles = B_pad // TB

    w2_row = w2.reshape(1, HIDDEN)                 # [1, 128] for the lane-reduce

    out = pl.pallas_call(
        discriminator_kernel,
        out_shape=jax.ShapeDtypeStruct((num_tiles, TB), jnp.float32),
        grid_spec=pltpu.PrefetchScalarGridSpec(
            num_scalar_prefetch=0,
            grid=(num_tiles,),
            in_specs=[
                pl.BlockSpec((TB, IMAGE_DIM), lambda i: (i, 0)),      # x: tiled batch
                pl.BlockSpec((IMAGE_DIM, HIDDEN), lambda i: (0, 0)),  # w1: resident
                pl.BlockSpec((1, HIDDEN), lambda i: (0, 0)),          # b1: resident
                pl.BlockSpec((1, HIDDEN), lambda i: (0, 0)),          # w2 row: resident
                pl.BlockSpec((1, 1), lambda i: (0, 0)),               # b2: resident
            ],
            out_specs=pl.BlockSpec((1, TB), lambda i: (i, 0)),        # lane-dense rows
        ),
        compiler_params=pltpu.CompilerParams(
            dimension_semantics=("parallel",),
        ),
    )(x, w1, b1, w2_row, b2)

    # (num_tiles, TB) row-major == padded batch order; drop padding, shape to (B, 1).
    return out.reshape(B_pad)[:B].reshape(B, OUT)


def init_params(key):
    # PyTorch nn.Linear default init: U(-1/sqrt(fan_in), 1/sqrt(fan_in))
    k1, k2, k3, k4 = jax.random.split(key, 4)
    bound1 = 1.0 / jnp.sqrt(IMAGE_DIM)
    bound2 = 1.0 / jnp.sqrt(HIDDEN)
    w1 = jax.random.uniform(k1, (IMAGE_DIM, HIDDEN), jnp.float32, -bound1, bound1)
    b1 = jax.random.uniform(k2, (1, HIDDEN), jnp.float32, -bound1, bound1)
    w2 = jax.random.uniform(k3, (HIDDEN, OUT), jnp.float32, -bound2, bound2)
    b2 = jax.random.uniform(k4, (1, OUT), jnp.float32, -bound2, bound2)
    return w1, b1, w2, b2


def reference_forward(x, w1, b1, w2, b2):
    h = x @ w1 + b1
    h = jnp.where(h > 0, h, 0.1 * h)
    z = h @ w2 + b2
    return jax.nn.sigmoid(z)


if __name__ == "__main__":
    key = jax.random.PRNGKey(0)
    kx, kx2, kp = jax.random.split(key, 3)

    w1, b1, w2, b2 = init_params(kp)

    # Small batch (exercises padding up to the 128-row tile).
    B = 8
    x = jax.random.normal(kx, (B, IMAGE_DIM), jnp.float32)
    out = jax.block_until_ready(discriminator_forward(x, w1, b1, w2, b2))
    ref = reference_forward(x, w1, b1, w2, b2)
    assert out.shape == (B, OUT), out.shape
    assert jnp.allclose(out, ref, atol=1e-5, rtol=1e-5), (
        f"max diff {jnp.max(jnp.abs(out - ref))}"
    )

    # Non-multiple-of-128 batch (exercises the pad + slice path).
    B2 = 300
    x2 = jax.random.normal(kx2, (B2, IMAGE_DIM), jnp.float32)
    out2 = jax.block_until_ready(discriminator_forward(x2, w1, b1, w2, b2))
    ref2 = reference_forward(x2, w1, b1, w2, b2)
    assert out2.shape == (B2, OUT), out2.shape
    assert jnp.allclose(out2, ref2, atol=1e-5, rtol=1e-5), (
        f"max diff {jnp.max(jnp.abs(out2 - ref2))}"
    )

    print("KERNEL_OK")
</pallas_src>

<mosaic_0001>
module attributes {stable_mosaic.version = 11 : i64} {
  func.func @discriminator_kernel(%arg0: i32, %arg1: memref<128x784xf32, #tpu.memory_space<vmem>>, %arg2: memref<784x128xf32, #tpu.memory_space<vmem>>, %arg3: memref<1x128xf32, #tpu.memory_space<vmem>>, %arg4: memref<1x128xf32, #tpu.memory_space<vmem>>, %arg5: memref<1x1xf32, #tpu.memory_space<vmem>>, %arg6: memref<1x128xf32, #tpu.memory_space<vmem>>) attributes {dimension_semantics = [#tpu.dimension_semantics<parallel>], iteration_bounds = array<i64: 1>, scalar_prefetch = 0 : i64, scratch_operands = 0 : i64, tpu.core_type = #tpu.core_type<tc>, window_params = [{transform_indices = @transform_0, window_bounds = array<i64: 128, 784>}, {pipeline_mode = #tpu.pipeline_mode<synchronous>, transform_indices = @transform_1, window_bounds = array<i64: 784, 128>}, {pipeline_mode = #tpu.pipeline_mode<synchronous>, transform_indices = @transform_2, window_bounds = array<i64: 1, 128>}, {pipeline_mode = #tpu.pipeline_mode<synchronous>, transform_indices = @transform_3, window_bounds = array<i64: 1, 128>}, {pipeline_mode = #tpu.pipeline_mode<synchronous>, transform_indices = @transform_4, window_bounds = array<i64: 1, 1>}, {transform_indices = @transform_5, window_bounds = array<i64: 1, 128>}]} {
    %c0 = arith.constant 0 : index
    %c0_0 = arith.constant 0 : index
    %0 = vector.load %arg1[%c0, %c0_0] : memref<128x784xf32, #tpu.memory_space<vmem>>, vector<128x784xf32>
    %c0_1 = arith.constant 0 : index
    %c0_2 = arith.constant 0 : index
    %1 = vector.load %arg2[%c0_1, %c0_2] : memref<784x128xf32, #tpu.memory_space<vmem>>, vector<784x128xf32>
    %cst = arith.constant dense<0.000000e+00> : vector<128x128xf32>
    %2 = tpu.matmul %0, %1, %cst {dimension_numbers = #tpu.dot_dimension_numbers<[1], [0], [0], [1], [0, 0, 1, 1], [], []>} : vector<128x784xf32>, vector<784x128xf32>, vector<128x128xf32> -> vector<128x128xf32>
    %c0_3 = arith.constant 0 : index
    %c0_4 = arith.constant 0 : index
    %3 = vector.load %arg3[%c0_3, %c0_4] : memref<1x128xf32, #tpu.memory_space<vmem>>, vector<1x128xf32>
    %4 = vector.broadcast %3 : vector<1x128xf32> to vector<128x128xf32>
    %5 = arith.addf %2, %4 : vector<128x128xf32>
    %cst_5 = arith.constant 1.000000e-01 : f32
    %6 = vector.broadcast %cst_5 : f32 to vector<128x128xf32>
    %7 = arith.mulf %6, %5 : vector<128x128xf32>
    %8 = arith.maximumf %5, %7 : vector<128x128xf32>
    %c0_6 = arith.constant 0 : index
    %c0_7 = arith.constant 0 : index
    %9 = vector.load %arg4[%c0_6, %c0_7] : memref<1x128xf32, #tpu.memory_space<vmem>>, vector<1x128xf32>
    %10 = vector.broadcast %9 : vector<1x128xf32> to vector<128x128xf32>
    %11 = arith.mulf %8, %10 : vector<128x128xf32>
    %cst_8 = arith.constant dense<0.000000e+00> : vector<128xf32>
    %12 = vector.multi_reduction <add>, %11, %cst_8 [1] : vector<128x128xf32> to vector<128xf32>
    %13 = vector.shape_cast %12 : vector<128xf32> to vector<1x128xf32>
    %c0_9 = arith.constant 0 : index
    %c0_10 = arith.constant 0 : index
    %14 = vector.load %arg5[%c0_9, %c0_10] : memref<1x1xf32, #tpu.memory_space<vmem>>, vector<1x1xf32>
    %15 = vector.broadcast %14 : vector<1x1xf32> to vector<1x128xf32>
    %16 = arith.addf %13, %15 : vector<1x128xf32>
    %cst_11 = arith.constant 0.000000e+00 : f32
    %17 = vector.broadcast %cst_11 : f32 to vector<1x128xf32>
    %18 = arith.subf %17, %16 : vector<1x128xf32>
    %19 = math.exp %18 : vector<1x128xf32>
    %cst_12 = arith.constant 1.000000e+00 : f32
    %20 = vector.broadcast %cst_12 : f32 to vector<1x128xf32>
    %21 = arith.addf %20, %19 : vector<1x128xf32>
    %cst_13 = arith.constant 1.000000e+00 : f32
    %22 = vector.broadcast %cst_13 : f32 to vector<1x128xf32>
    %23 = arith.divf %22, %21 : vector<1x128xf32>
    %c0_14 = arith.constant 0 : index
    %c0_15 = arith.constant 0 : index
    %24 = vector.load %arg6[%c0_14, %c0_15] : memref<1x128xf32, #tpu.memory_space<vmem>>, vector<1x128xf32>
    tpu.vector_store %arg6[%c0_14, %c0_15], %23 {strides = array<i32>} : memref<1x128xf32, #tpu.memory_space<vmem>>, vector<1x128xf32>,
    return
  }
  func.func @transform_0(%arg0: i32) -> (i32, i32) {
    %c0_i32 = arith.constant 0 : i32
    %c0_i32_0 = arith.constant 0 : i32
    return %arg0, %c0_i32 : i32, i32
  }
  func.func @transform_1(%arg0: i32) -> (i32, i32) {
    %c0_i32 = arith.constant 0 : i32
    %c0_i32_0 = arith.constant 0 : i32
    %c0_i32_1 = arith.constant 0 : i32
    return %c0_i32, %c0_i32_0 : i32, i32
  }
  func.func @transform_2(%arg0: i32) -> (i32, i32) {
    %c0_i32 = arith.constant 0 : i32
    %c0_i32_0 = arith.constant 0 : i32
    %c0_i32_1 = arith.constant 0 : i32
    return %c0_i32, %c0_i32_0 : i32, i32
  }
  func.func @transform_3(%arg0: i32) -> (i32, i32) {
    %c0_i32 = arith.constant 0 : i32
    %c0_i32_0 = arith.constant 0 : i32
    %c0_i32_1 = arith.constant 0 : i32
    return %c0_i32, %c0_i32_0 : i32, i32
  }
  func.func @transform_4(%arg0: i32) -> (i32, i32) {
    %c0_i32 = arith.constant 0 : i32
    %c0_i32_0 = arith.constant 0 : i32
    %c0_i32_1 = arith.constant 0 : i32
    return %c0_i32, %c0_i32_0 : i32, i32
  }
  func.func @transform_5(%arg0: i32) -> (i32, i32) {
    %c0_i32 = arith.constant 0 : i32
    %c0_i32_0 = arith.constant 0 : i32
    return %arg0, %c0_i32 : i32, i32
  }
}

</mosaic_0001>

<bundles_post_ra>
// kernel: tpu_custom_call.1
= control target key start
LH: loop header
LB: loop body
LE: loop exit
PB: predicated region body
PF: predicated region fallthrough
CT: control target
= control target key end

     0   :  { %s2575_s0 = inlined_call_operand.vmem [shape: f32[128,784], index: 0, kind: input, shape index: {}]   ;;  %s2576_s1 = inlined_call_operand.vmem [shape: f32[784,128], index: 1, kind: input, shape index: {}]   ;;  %s2577_s2 = inlined_call_operand.vmem [shape: f32[1,128], index: 2, kind: input, shape index: {}]   ;;  %s2578_s3 = inlined_call_operand.vmem [shape: f32[1,128], index: 3, kind: input, shape index: {}]   ;;  %s2579_s4 = inlined_call_operand.<no memory space> [shape: f32[1,1], index: 4, kind: input, shape index: {}]   ;;  %s2580_s5 = inlined_call_operand.hbm [shape: f32[1,128], index: 5, kind: output, shape index: {}]  }
   0x1   :  { %v10_v0 = vstv %s2579_s4 }
   0x2   :  { %11 = vst [vmem:[#allocation2] sm:$0x1] %v10_v0 }
   0x3   :  { %v151_v1 = vld [vmem:[%s2576_s1 + $0x80] sm:$0xff]  ;;  %v152_v2 = vld [vmem:[%s2576_s1 + $0x88] sm:$0xff]  ;;  %v153_v12 = vld [vmem:[%s2576_s1 + $0x90] sm:$0xff] }
   0x4   :  { %v183_v3 = vld [vmem:[%s2576_s1 + $0x180] sm:$0xff]  ;;  %v1525_v4 = vpack.c.bf16 %v152_v2, %v151_v1  ;;  %v184_v5 = vld [vmem:[%s2576_s1 + $0x188] sm:$0xff]  ;;  %v154_v14 = vld [vmem:[%s2576_s1 + $0x98] sm:$0xff] }
   0x5   :  { %v135_v6 = vld [vmem:[%s2576_s1] sm:$0xff]  ;;  %v136_v7 = vld [vmem:[%s2576_s1 + $0x8] sm:$0xff]  ;;  %v1557_v8 = vpack.c.bf16 %v184_v5, %v183_v3  ;;  %v185_v15 = vld [vmem:[%s2576_s1 + $0x190] sm:$0xff]  ;;  %v1529_v17 = vpack.c.bf16 %v154_v14, %v153_v12 }
   0x6   :  { %v1527_v9 = vpack.c.bf16 %v136_v7, %v135_v6  ;;  %v167_v10 = vld [vmem:[%s2576_s1 + $0x100] sm:$0xff]  ;;  %v168_v11 = vld [vmem:[%s2576_s1 + $0x108] sm:$0xff]  ;;  %1526 = vmatprep.subr.bf16.mxu0 %v1525_v4  ;;  %v186_v16 = vld [vmem:[%s2576_s1 + $0x198] sm:$0xff] }
   0x7   :  { %v1559_v13 = vpack.c.bf16 %v168_v11, %v167_v10  ;;  %1558 = vmatprep.subr.bf16.mxu1 %v1557_v8  ;;  %v1561_v18 = vpack.c.bf16 %v186_v16, %v185_v15  ;;  %v137_v19 = vld [vmem:[%s2576_s1 + $0x10] sm:$0xff]  ;;  %v138_v20 = vld [vmem:[%s2576_s1 + $0x18] sm:$0xff]  ;;  %v155_v24 = vld [vmem:[%s2576_s1 + $0xa0] sm:$0xff] }
   0x8   :  { %1528 = vmatpush3.bf16.msra.mxu0 %v1527_v9  ;;  %v169_v21 = vld [vmem:[%s2576_s1 + $0x110] sm:$0xff]  ;;  %v1531_v22 = vpack.c.bf16 %v138_v20, %v137_v19  ;;  %v170_v23 = vld [vmem:[%s2576_s1 + $0x118] sm:$0xff]  ;;  %v156_v25 = vld [vmem:[%s2576_s1 + $0xa8] sm:$0xff] }
   0x9   :  { %1560 = vmatpush3.bf16.msra.mxu1 %v1559_v13  ;;  %1530 = vmatprep.subr.bf16.mxu0 %v1529_v17  ;;  %v1563_v26 = vpack.c.bf16 %v170_v23, %v169_v21  ;;  %v1533_v27 = vpack.c.bf16 %v156_v25, %v155_v24  ;;  %v187_v28 = vld [vmem:[%s2576_s1 + $0x1a0] sm:$0xff]  ;;  %v188_v29 = vld [vmem:[%s2576_s1 + $0x1a8] sm:$0xff]  ;;  %v157_v36 = vld [vmem:[%s2576_s1 + $0xb0] sm:$0xff] }
   0xa   :  { %1562 = vmatprep.subr.bf16.mxu1 %v1561_v18  ;;  %v139_v30 = vld [vmem:[%s2576_s1 + $0x20] sm:$0xff]  ;;  %v1565_v31 = vpack.c.bf16 %v188_v29, %v187_v28  ;;  %v140_v32 = vld [vmem:[%s2576_s1 + $0x28] sm:$0xff]  ;;  %v158_v37 = vld [vmem:[%s2576_s1 + $0xb8] sm:$0xff] }
   0xb   :  { %v171_v33 = vld [vmem:[%s2576_s1 + $0x120] sm:$0xff]  ;;  %v172_v34 = vld [vmem:[%s2576_s1 + $0x128] sm:$0xff]  ;;  %v1535_v35 = vpack.c.bf16 %v140_v32, %v139_v30  ;;  %v189_v38 = vld [vmem:[%s2576_s1 + $0x1b0] sm:$0xff]  ;;  %v1537_v40 = vpack.c.bf16 %v158_v37, %v157_v36 }
   0xc   :  { %1532 = vmatpush3.bf16.msra.mxu0 %v1531_v22  ;;  %v1567_v39 = vpack.c.bf16 %v172_v34, %v171_v33  ;;  %v190_v41 = vld [vmem:[%s2576_s1 + $0x1b8] sm:$0xff]  ;;  %v141_v42 = vld [vmem:[%s2576_s1 + $0x30] sm:$0xff]  ;;  %v159_v47 = vld [vmem:[%s2576_s1 + $0xc0] sm:$0xff] }
   0xd   :  { %1564 = vmatpush3.bf16.msra.mxu1 %v1563_v26  ;;  %1534 = vmatprep.subr.bf16.mxu0 %v1533_v27  ;;  %v142_v43 = vld [vmem:[%s2576_s1 + $0x38] sm:$0xff]  ;;  %v1569_v44 = vpack.c.bf16 %v190_v41, %v189_v38  ;;  %v173_v45 = vld [vmem:[%s2576_s1 + $0x130] sm:$0xff]  ;;  %v160_v48 = vld [vmem:[%s2576_s1 + $0xc8] sm:$0xff] }
   0xe   :  { %1566 = vmatprep.subr.bf16.mxu1 %v1565_v31  ;;  %v174_v46 = vld [vmem:[%s2576_s1 + $0x138] sm:$0xff]  ;;  %v191_v49 = vld [vmem:[%s2576_s1 + $0x1c0] sm:$0xff]  ;;  %v192_v50 = vld [vmem:[%s2576_s1 + $0x1c8] sm:$0xff]  ;;  %v1539_v51 = vpack.c.bf16 %v142_v43, %v141_v42  ;;  %v1541_v53 = vpack.c.bf16 %v160_v48, %v159_v47 }
   0xf   :  { %v1571_v52 = vpack.c.bf16 %v174_v46, %v173_v45  ;;  %v143_v54 = vld [vmem:[%s2576_s1 + $0x40] sm:$0xff]  ;;  %v144_v55 = vld [vmem:[%s2576_s1 + $0x48] sm:$0xff]  ;;  %v1573_v57 = vpack.c.bf16 %v192_v50, %v191_v49  ;;  %v161_v59 = vld [vmem:[%s2576_s1 + $0xd0] sm:$0xff] }
  0x10   :  { %1536 = vmatpush3.bf16.msra.mxu0 %v1535_v35  ;;  %v175_v56 = vld [vmem:[%s2576_s1 + $0x140] sm:$0xff]  ;;  %v176_v58 = vld [vmem:[%s2576_s1 + $0x148] sm:$0xff]  ;;  %v162_v60 = vld [vmem:[%s2576_s1 + $0xd8] sm:$0xff]  ;;  %v1543_v63 = vpack.c.bf16 %v144_v55, %v143_v54 }
  0x11   :  { %1568 = vmatpush3.bf16.msra.mxu1 %v1567_v39  ;;  %1538 = vmatprep.subr.bf16.mxu0 %v1537_v40  ;;  %v193_v61 = vld [vmem:[%s2576_s1 + $0x1d0] sm:$0xff]  ;;  %v194_v62 = vld [vmem:[%s2576_s1 + $0x1d8] sm:$0xff]  ;;  %v1575_v0 = vpack.c.bf16 %v176_v58, %v175_v56  ;;  %v1545_v1 = vpack.c.bf16 %v162_v60, %v161_v59  ;;  %v163_v7 = vld [vmem:[%s2576_s1 + $0xe0] sm:$0xff] }
  0x12   :  { %1570 = vmatprep.subr.bf16.mxu1 %v1569_v44  ;;  %v145_v2 = vld [vmem:[%s2576_s1 + $0x50] sm:$0xff]  ;;  %v146_v3 = vld [vmem:[%s2576_s1 + $0x58] sm:$0xff]  ;;  %v1577_v5 = vpack.c.bf16 %v194_v62, %v193_v61  ;;  %v164_v8 = vld [vmem:[%s2576_s1 + $0xe8] sm:$0xff] }
  0x13   :  { %v177_v4 = vld [vmem:[%s2576_s1 + $0x150] sm:$0xff]  ;;  %v178_v6 = vld [vmem:[%s2576_s1 + $0x158] sm:$0xff]  ;;  %v195_v9 = vld [vmem:[%s2576_s1 + $0x1e0] sm:$0xff]  ;;  %v1547_v11 = vpack.c.bf16 %v146_v3, %v145_v2  ;;  %v1549_v15 = vpack.c.bf16 %v164_v8, %v163_v7 }
  0x14   :  { %1540 = vmatpush3.bf16.msra.mxu0 %v1539_v51  ;;  %v196_v10 = vld [vmem:[%s2576_s1 + $0x1e8] sm:$0xff]  ;;  %v147_v12 = vld [vmem:[%s2576_s1 + $0x60] sm:$0xff]  ;;  %v1579_v14 = vpack.c.bf16 %v178_v6, %v177_v4  ;;  %v26_v18 = vld [vmem:[%s2575_s0 + $0x18] sm:$0xff] }
  0x15   :  { %1572 = vmatpush3.bf16.msra.mxu1 %v1571_v52  ;;  %1542 = vmatprep.subr.bf16.mxu0 %v1541_v53  ;;  %v148_v13 = vld [vmem:[%s2576_s1 + $0x68] sm:$0xff]  ;;  %v179_v16 = vld [vmem:[%s2576_s1 + $0x160] sm:$0xff]  ;;  %v1581_v19 = vpack.c.bf16 %v196_v10, %v195_v9  ;;  %v165_v21 = vld [vmem:[%s2576_s1 + $0xf0] sm:$0xff] }
  0x16   :  { %1574 = vmatprep.subr.bf16.mxu1 %v1573_v57  ;;  %v24_v17 = vld [vmem:[%s2575_s0 + $0x8] sm:$0xff]  ;;  %v166_v22 = vld [vmem:[%s2576_s1 + $0xf8] sm:$0xff]  ;;  %v197_v23 = vld [vmem:[%s2576_s1 + $0x1f0] sm:$0xff]  ;;  %498 = vmatprep.mubr.f32.mxu1 %v26_v18  ;;  %v1551_v25 = vpack.c.bf16 %v148_v13, %v147_v12 }
  0x17   :  { %v180_v20 = vld [vmem:[%s2576_s1 + $0x168] sm:$0xff]  ;;  %353 = vmatprep.mubr.f32.mxu0 %v24_v17  ;;  %v198_v24 = vld [vmem:[%s2576_s1 + $0x1f8] sm:$0xff]  ;;  %v1553_v27 = vpack.c.bf16 %v166_v22, %v165_v21  ;;  %v149_v28 = vld [vmem:[%s2576_s1 + $0x70] sm:$0xff] }
  0x18   :  { %1544 = vmatpush3.bf16.msra.mxu0 %v1543_v63  ;;  %v1583_v26 = vpack.c.bf16 %v180_v20, %v179_v16  ;;  %v150_v29 = vld [vmem:[%s2576_s1 + $0x78] sm:$0xff]  ;;  %v181_v30 = vld [vmem:[%s2576_s1 + $0x170] sm:$0xff]  ;;  %v1585_v31 = vpack.c.bf16 %v198_v24, %v197_v23  ;;  %v215_v33 = vld [vmem:[%s2576_s1 + $0x280] sm:$0xff] }
  0x19   :  { %1576 = vmatpush3.bf16.msra.mxu1 %v1575_v0  ;;  %1546 = vmatprep.subr.bf16.mxu0 %v1545_v1  ;;  %v182_v32 = vld [vmem:[%s2576_s1 + $0x178] sm:$0xff]  ;;  %v216_v34 = vld [vmem:[%s2576_s1 + $0x288] sm:$0xff]  ;;  %v1555_v35 = vpack.c.bf16 %v150_v29, %v149_v28  ;;  %v199_v38 = vld [vmem:[%s2576_s1 + $0x200] sm:$0xff] }
  0x1a   :  { %1578 = vmatprep.subr.bf16.mxu1 %v1577_v5  ;;  %v1587_v36 = vpack.c.bf16 %v182_v32, %v181_v30  ;;  %v1589_v37 = vpack.c.bf16 %v216_v34, %v215_v33  ;;  %v200_v39 = vld [vmem:[%s2576_s1 + $0x208] sm:$0xff]  ;;  %v217_v40 = vld [vmem:[%s2576_s1 + $0x290] sm:$0xff]  ;;  %v218_v41 = vld [vmem:[%s2576_s1 + $0x298] sm:$0xff] }
  0x1b   :  { %v23_v42 = vld [vmem:[%s2575_s0] sm:$0xff]  ;;  %v25_v43 = vld [vmem:[%s2575_s0 + $0x10] sm:$0xff]  ;;  %v1591_v44 = vpack.c.bf16 %v200_v39, %v199_v38  ;;  %v1593_v47 = vpack.c.bf16 %v218_v41, %v217_v40  ;;  %v202_v49 = vld [vmem:[%s2576_s1 + $0x218] sm:$0xff] }
  0x1c   :  { %1548 = vmatpush3.bf16.msra.mxu0 %v1547_v11  ;;  %v31_v45 = vld [vmem:[%s2575_s0 + $0x40] sm:$0xff]  ;;  %v33_v46 = vld [vmem:[%s2575_s0 + $0x50] sm:$0xff]  ;;  %v220_v51 = vld [vmem:[%s2576_s1 + $0x2a8] sm:$0xff] }
  0x1d   :  { %1580 = vmatpush3.bf16.msra.mxu1 %v1579_v14  ;;  %1550 = vmatprep.subr.bf16.mxu0 %v1549_v15  ;;  %v201_v48 = vld [vmem:[%s2576_s1 + $0x210] sm:$0xff]  ;;  %v219_v50 = vld [vmem:[%s2576_s1 + $0x2a0] sm:$0xff]  ;;  %v30_v52 = vld [vmem:[%s2575_s0 + $0x38] sm:$0xff] }
  0x1e   :  { %1582 = vmatprep.subr.bf16.mxu1 %v1581_v19  ;;  %v32_v53 = vld [vmem:[%s2575_s0 + $0x48] sm:$0xff]  ;;  %v38_v54 = vld [vmem:[%s2575_s0 + $0x78] sm:$0xff]  ;;  %v1595_v55 = vpack.c.bf16 %v202_v49, %v201_v48  ;;  %v1597_v57 = vpack.c.bf16 %v220_v51, %v219_v50  ;;  %v203_v58 = vld [vmem:[%s2576_s1 + $0x220] sm:$0xff] }
  0x1f   :  { %v40_v56 = vld [vmem:[%s2575_s0 + $0x88] sm:$0xff]  ;;  %v221_v60 = vld [vmem:[%s2576_s1 + $0x2b0] sm:$0xff]  ;;  %v222_v61 = vld [vmem:[%s2576_s1 + $0x2b8] sm:$0xff] }
  0x20   :  { %1552 = vmatpush3.bf16.msra.mxu0 %v1551_v25  ;;  %v204_v59 = vld [vmem:[%s2576_s1 + $0x228] sm:$0xff]  ;;  %v37_v62 = vld [vmem:[%s2575_s0 + $0x70] sm:$0xff]  ;;  %v39_v63 = vld [vmem:[%s2575_s0 + $0x80] sm:$0xff]  ;;  %v1601_v3 = vpack.c.bf16 %v222_v61, %v221_v60 }
  0x21   :  { %1584 = vmatpush3.bf16.msra.mxu1 %v1583_v26  ;;  %1554 = vmatprep.subr.bf16.mxu0 %v1553_v27  ;;  %v45_v0 = vld [vmem:[%s2575_s0 + $0xb0] sm:$0xff]  ;;  %v1599_v1 = vpack.c.bf16 %v204_v59, %v203_v58  ;;  %v47_v2 = vld [vmem:[%s2575_s0 + $0xc0] sm:$0xff]  ;;  %v206_v5 = vld [vmem:[%s2576_s1 + $0x238] sm:$0xff] }
  0x22   :  { %1586 = vmatprep.subr.bf16.mxu1 %v1585_v31  ;;  %v205_v4 = vld [vmem:[%s2576_s1 + $0x230] sm:$0xff]  ;;  %v223_v6 = vld [vmem:[%s2576_s1 + $0x2c0] sm:$0xff]  ;;  %v224_v7 = vld [vmem:[%s2576_s1 + $0x2c8] sm:$0xff] }
  0x23   :  { %v44_v8 = vld [vmem:[%s2575_s0 + $0xa8] sm:$0xff]  ;;  %v46_v9 = vld [vmem:[%s2575_s0 + $0xb8] sm:$0xff]  ;;  %v1603_v11 = vpack.c.bf16 %v206_v5, %v205_v4  ;;  %v1605_v13 = vpack.c.bf16 %v224_v7, %v223_v6  ;;  %v207_v14 = vld [vmem:[%s2576_s1 + $0x240] sm:$0xff] }
  0x24   :  { %1556 = vmatpush3.bf16.msra.mxu0 %v1555_v35  ;;  %v52_v10 = vld [vmem:[%s2575_s0 + $0xe8] sm:$0xff]  ;;  %v54_v12 = vld [vmem:[%s2575_s0 + $0xf8] sm:$0xff]  ;;  %v225_v16 = vld [vmem:[%s2576_s1 + $0x2d0] sm:$0xff] }
  0x25   :  { %1588 = vmatpush3.bf16.msra.mxu1 %v1587_v36  ;;  %1590 = vmatprep.subr.bf16.mxu0 %v1589_v37  ;;  %v208_v15 = vld [vmem:[%s2576_s1 + $0x248] sm:$0xff]  ;;  %v226_v17 = vld [vmem:[%s2576_s1 + $0x2d8] sm:$0xff]  ;;  %v51_v18 = vld [vmem:[%s2575_s0 + $0xe0] sm:$0xff] }
  0x26   :  { %1625 = vmatprep.subr.bf16.mxu1 %v1589_v37  ;;  %v53_v19 = vld [vmem:[%s2575_s0 + $0xf0] sm:$0xff]  ;;  %v59_v20 = vld [vmem:[%s2575_s0 + $0x120] sm:$0xff]  ;;  %v1607_v21 = vpack.c.bf16 %v208_v15, %v207_v14  ;;  %v1609_v23 = vpack.c.bf16 %v226_v17, %v225_v16  ;;  %v210_v25 = vld [vmem:[%s2576_s1 + $0x258] sm:$0xff] }
  0x27   :  { %354 = vmatmul.mubr.f32.vlgmr.msra.gmra.mrb[0].mxu0 %v23_v42  ;;  %v61_v22 = vld [vmem:[%s2575_s0 + $0x130] sm:$0xff]  ;;  %v227_v26 = vld [vmem:[%s2576_s1 + $0x2e0] sm:$0xff]  ;;  %v228_v27 = vld [vmem:[%s2576_s1 + $0x2e8] sm:$0xff] }
  0x28   :  { %499 = vmatmul.mubr.f32.vlgmr.msra.gmra.mrb[0].mxu1 %v25_v43  ;;  %358 = vmatprep.mubr.f32.mxu0 %v31_v45  ;;  %v209_v24 = vld [vmem:[%s2576_s1 + $0x250] sm:$0xff]  ;;  %v58_v28 = vld [vmem:[%s2575_s0 + $0x118] sm:$0xff]  ;;  %v60_v29 = vld [vmem:[%s2575_s0 + $0x128] sm:$0xff]  ;;  %v1613_v33 = vpack.c.bf16 %v228_v27, %v227_v26 }
  0x29   :  { %1633 = vmatpush3.bf16.msra.mxu1 %v1591_v44  ;;  %503 = vmatprep.mubr.f32.mxu1 %v33_v46  ;;  %v66_v30 = vld [vmem:[%s2575_s0 + $0x158] sm:$0xff]  ;;  %v1611_v31 = vpack.c.bf16 %v210_v25, %v209_v24  ;;  %v68_v32 = vld [vmem:[%s2575_s0 + $0x168] sm:$0xff]  ;;  %v211_v34 = vld [vmem:[%s2576_s1 + $0x260] sm:$0xff] }
  0x2a   :  { %1592 = vmatpush3.bf16.msra.mxu0 %v1591_v44  ;;  %1626 = vmatprep.subr.bf16.mxu1 %v1593_v47  ;;  %v212_v35 = vld [vmem:[%s2576_s1 + $0x268] sm:$0xff]  ;;  %v229_v36 = vld [vmem:[%s2576_s1 + $0x2f0] sm:$0xff]  ;;  %v230_v37 = vld [vmem:[%s2576_s1 + $0x2f8] sm:$0xff] }
  0x2b   :  { %359 = vmatmul.mubr.f32.gmra.mrb[2].mxu0 %v30_v52  ;;  %1594 = vmatprep.subr.bf16.mxu0 %v1593_v47  ;;  %v65_v38 = vld [vmem:[%s2575_s0 + $0x150] sm:$0xff]  ;;  %v67_v39 = vld [vmem:[%s2575_s0 + $0x160] sm:$0xff]  ;;  %v1615_v41 = vpack.c.bf16 %v212_v35, %v211_v34  ;;  %v1617_v43 = vpack.c.bf16 %v230_v37, %v229_v36  ;;  %v214_v45 = vld [vmem:[%s2576_s1 + $0x278] sm:$0xff] }
  0x2c   :  { %504 = vmatmul.mubr.f32.gmra.mrb[2].mxu1 %v32_v53  ;;  %363 = vmatprep.mubr.f32.mxu0 %v38_v54  ;;  %v73_v40 = vld [vmem:[%s2575_s0 + $0x190] sm:$0xff]  ;;  %v75_v42 = vld [vmem:[%s2575_s0 + $0x1a0] sm:$0xff]  ;;  %v232_v47 = vld [vmem:[%s2576_s1 + $0x308] sm:$0xff] }
  0x2d   :  { %508 = vmatprep.mubr.f32.mxu1 %v40_v56  ;;  %1634 = vmatpush3.bf16.msra.mxu1 %v1595_v55  ;;  %v213_v44 = vld [vmem:[%s2576_s1 + $0x270] sm:$0xff]  ;;  %v231_v46 = vld [vmem:[%s2576_s1 + $0x300] sm:$0xff]  ;;  %v72_v48 = vld [vmem:[%s2575_s0 + $0x188] sm:$0xff] }
  0x2e   :  { %1596 = vmatpush3.bf16.msra.mxu0 %v1595_v55  ;;  %1627 = vmatprep.subr.bf16.mxu1 %v1597_v57  ;;  %v74_v49 = vld [vmem:[%s2575_s0 + $0x198] sm:$0xff]  ;;  %v80_v50 = vld [vmem:[%s2575_s0 + $0x1c8] sm:$0xff]  ;;  %v1619_v51 = vpack.c.bf16 %v214_v45, %v213_v44  ;;  %v2164_v53 = vpack.c.bf16 %v232_v47, %v231_v46  ;;  %v79_v54 = vld [vmem:[%s2575_s0 + $0x1c0] sm:$0xff] }
  0x2f   :  { %364 = vmatmul.mubr.f32.gmra.mrb[4].mxu0 %v37_v62  ;;  %1598 = vmatprep.subr.bf16.mxu0 %v1597_v57  ;;  %v82_v52 = vld [vmem:[%s2575_s0 + $0x1d8] sm:$0xff]  ;;  %v81_v55 = vld [vmem:[%s2575_s0 + $0x1d0] sm:$0xff]  ;;  %v87_v56 = vld [vmem:[%s2575_s0 + $0x200] sm:$0xff] }
  0x30   :  { %509 = vmatmul.mubr.f32.gmra.mrb[4].mxu1 %v39_v63  ;;  %368 = vmatprep.mubr.f32.mxu0 %v45_v0  ;;  %v89_v57 = vld [vmem:[%s2575_s0 + $0x210] sm:$0xff]  ;;  %v86_v58 = vld [vmem:[%s2575_s0 + $0x1f8] sm:$0xff]  ;;  %v88_v59 = vld [vmem:[%s2575_s0 + $0x208] sm:$0xff] }
  0x31   :  { %513 = vmatprep.mubr.f32.mxu1 %v47_v2  ;;  %1635 = vmatpush3.bf16.msra.mxu1 %v1599_v1  ;;  %v94_v60 = vld [vmem:[%s2575_s0 + $0x238] sm:$0xff]  ;;  %v96_v61 = vld [vmem:[%s2575_s0 + $0x248] sm:$0xff] }
  0x32   :  { %1600 = vmatpush3.bf16.msra.mxu0 %v1599_v1  ;;  %1628 = vmatprep.subr.bf16.mxu1 %v1601_v3 }
  0x33   :  { %369 = vmatmul.mubr.f32.gmra.mrb[6].mxu0 %v44_v8  ;;  %1602 = vmatprep.subr.bf16.mxu0 %v1601_v3 }
  0x34   :  { %514 = vmatmul.mubr.f32.gmra.mrb[6].mxu1 %v46_v9  ;;  %373 = vmatprep.mubr.f32.mxu0 %v52_v10 }
  0x35   :  { %518 = vmatprep.mubr.f32.mxu1 %v54_v12  ;;  %1636 = vmatpush3.bf16.msra.mxu1 %v1603_v11 }
  0x36   :  { %1604 = vmatpush3.bf16.msra.mxu0 %v1603_v11  ;;  %1629 = vmatprep.subr.bf16.mxu1 %v1605_v13 }
  0x37   :  { %374 = vmatmul.mubr.f32.gmra.mrb[8].mxu0 %v51_v18  ;;  %1606 = vmatprep.subr.bf16.mxu0 %v1605_v13 }
  0x38   :  { %519 = vmatmul.mubr.f32.gmra.mrb[8].mxu1 %v53_v19  ;;  %378 = vmatprep.mubr.f32.mxu0 %v59_v20 }
  0x39   :  { %523 = vmatprep.mubr.f32.mxu1 %v61_v22  ;;  %1637 = vmatpush3.bf16.msra.mxu1 %v1607_v21 }
  0x3a   :  { %1608 = vmatpush3.bf16.msra.mxu0 %v1607_v21  ;;  %1630 = vmatprep.subr.bf16.mxu1 %v1609_v23 }
  0x3b   :  { %379 = vmatmul.mubr.f32.gmra.mrb[10].mxu0 %v58_v28  ;;  %1610 = vmatprep.subr.bf16.mxu0 %v1609_v23 }
  0x3c   :  { %524 = vmatmul.mubr.f32.gmra.mrb[10].mxu1 %v60_v29  ;;  %383 = vmatprep.mubr.f32.mxu0 %v66_v30 }
  0x3d   :  { %528 = vmatprep.mubr.f32.mxu1 %v68_v32  ;;  %1638 = vmatpush3.bf16.msra.mxu1 %v1611_v31 }
  0x3e   :  { %1612 = vmatpush3.bf16.msra.mxu0 %v1611_v31  ;;  %1631 = vmatprep.subr.bf16.mxu1 %v1613_v33 }
  0x3f   :  { %384 = vmatmul.mubr.f32.gmra.mrb[12].mxu0 %v65_v38  ;;  %1614 = vmatprep.subr.bf16.mxu0 %v1613_v33 }
  0x40   :  { %529 = vmatmul.mubr.f32.gmra.mrb[12].mxu1 %v67_v39  ;;  %388 = vmatprep.mubr.f32.mxu0 %v73_v40 }
  0x41   :  { %533 = vmatprep.mubr.f32.mxu1 %v75_v42  ;;  %1639 = vmatpush3.bf16.msra.mxu1 %v1615_v41 }
  0x42   :  { %1616 = vmatpush3.bf16.msra.mxu0 %v1615_v41  ;;  %1632 = vmatprep.subr.bf16.mxu1 %v1617_v43 }
  0x43   :  { %389 = vmatmul.mubr.f32.gmra.mrb[14].mxu0 %v72_v48  ;;  %1618 = vmatprep.subr.bf16.mxu0 %v1617_v43 }
  0x44   :  { %534 = vmatmul.mubr.f32.gmra.mrb[14].mxu1 %v74_v49  ;;  %393 = vmatprep.mubr.f32.mxu0 %v80_v50 }
  0x45   :  { %538 = vmatprep.mubr.f32.mxu1 %v82_v52  ;;  %1640 = vmatpush3.bf16.msra.mxu1 %v1619_v51 }
  0x46   :  { %1620 = vmatpush3.bf16.msra.mxu0 %v1619_v51  ;;  %1622 = vmatprep.subr.bf16.mxu1 %v2164_v53 }
  0x47   :  { %394 = vmatmul.mubr.f32.gmra.mrb[16].mxu0 %v79_v54 }
  0x48   :  { %539 = vmatmul.mubr.f32.gmra.mrb[16].mxu1 %v81_v55  ;;  %398 = vmatprep.mubr.f32.mxu0 %v87_v56 }
  0x49   :  { %543 = vmatprep.mubr.f32.mxu1 %v89_v57 }
  0x4a   :  { %12 = vsyncpa [#allocation4], 0  ;;  %v93_v62 = vld [vmem:[%s2575_s0 + $0x230] sm:$0xff]  ;;  %v95_v63 = vld [vmem:[%s2575_s0 + $0x240] sm:$0xff]  ;;  %vm240_vm0 = vcmask 130048   ;;  %vm1105_vm1 = vcmask 130112  }
  0x4b   :  { %399 = vmatmul.mubr.f32.gmra.mrb[18].mxu0 %v86_v58  ;;  %v101_v0 = vld [vmem:[%s2575_s0 + $0x270] sm:$0xff]  ;;  %v103_v1 = vld [vmem:[%s2575_s0 + $0x280] sm:$0xff]  ;;  %v100_v2 = vld [vmem:[%s2575_s0 + $0x268] sm:$0xff]  ;;  %vm1112_vm2 = vcmask 195712   ;;  %vm1119_vm3 = vcmask 261312   ;;  %vm1126_vm4 = vcmask 326912  }
  0x4c   :  { %544 = vmatmul.mubr.f32.gmra.mrb[18].mxu1 %v88_v59  ;;  %403 = vmatprep.mubr.f32.mxu0 %v94_v60  ;;  %v102_v3 = vld [vmem:[%s2575_s0 + $0x278] sm:$0xff]  ;;  %v108_v4 = vld [vmem:[%s2575_s0 + $0x2a8] sm:$0xff]  ;;  %v107_v6 = vld [vmem:[%s2575_s0 + $0x2a0] sm:$0xff]  ;;  %vm1133_vm5 = vcmask 392512   ;;  %vm1140_vm6 = vcmask 458112   ;;  %vm1147_vm7 = vcmask 523712  }
  0x4d   :  { %548 = vmatprep.mubr.f32.mxu1 %v96_v61  ;;  %v110_v5 = vld [vmem:[%s2575_s0 + $0x2b8] sm:$0xff]  ;;  %v109_v7 = vld [vmem:[%s2575_s0 + $0x2b0] sm:$0xff]  ;;  %v115_v8 = vld [vmem:[%s2575_s0 + $0x2e0] sm:$0xff]  ;;  %vm1154_vm8 = vcmask 589312   ;;  %vm1161_vm9 = vcmask 654912   ;;  %vm1168_vm10 = vcmask 720512  }
  0x4e   :  { %v117_v9 = vld [vmem:[%s2575_s0 + $0x2f0] sm:$0xff]  ;;  %v114_v10 = vld [vmem:[%s2575_s0 + $0x2d8] sm:$0xff]  ;;  %v116_v11 = vld [vmem:[%s2575_s0 + $0x2e8] sm:$0xff]  ;;  %vm1175_vm11 = vcmask 786112   ;;  %vm1182_vm12 = vcmask 851712   ;;  %vm1189_vm13 = vcmask 917312  }
  0x4f   :  { %404 = vmatmul.mubr.f32.gmra.mrb[20].mxu0 %v93_v62  ;;  %v122_v12 = vld [vmem:[%s2575_s0 + $0x318] sm:$0xff]  ;;  %v124_v13 = vld [vmem:[%s2575_s0 + $0x328] sm:$0xff]  ;;  %v121_v14 = vld [vmem:[%s2575_s0 + $0x310] sm:$0xff]  ;;  %vm1196_vm14 = vcmask 982912   ;;  %vm1203_vm15 = vcmask 1048512  }
  0x50   :  { %549 = vmatmul.mubr.f32.gmra.mrb[20].mxu1 %v95_v63  ;;  %408 = vmatprep.mubr.f32.mxu0 %v101_v0  ;;  %v123_v15 = vld [vmem:[%s2575_s0 + $0x320] sm:$0xff]  ;;  %v129_v16 = vld [vmem:[%s2575_s0 + $0x350] sm:$0xff]  ;;  %v128_v18 = vld [vmem:[%s2575_s0 + $0x348] sm:$0xff] }
  0x51   :  { %553 = vmatprep.mubr.f32.mxu1 %v103_v1  ;;  %v131_v17 = vld [vmem:[%s2575_s0 + $0x360] sm:$0xff]  ;;  %v130_v19 = vld [vmem:[%s2575_s0 + $0x358] sm:$0xff]  ;;  %v28_v20 = vld [vmem:[%s2575_s0 + $0x28] sm:$0xff] }
  0x52   :  { %v112_v21 = vld [vmem:[%s2575_s0 + $0x2c8] sm:$0xff]  ;;  %v27_v22 = vld [vmem:[%s2575_s0 + $0x20] sm:$0xff]  ;;  %v34_v26 = vld [vmem:[%s2575_s0 + $0x58] sm:$0xff] }
  0x53   :  { %409 = vmatmul.mubr.f32.gmra.mrb[22].mxu0 %v100_v2  ;;  %v111_v23 = vld [vmem:[%s2575_s0 + $0x2c0] sm:$0xff]  ;;  %v118_v27 = vld [vmem:[%s2575_s0 + $0x2f8] sm:$0xff]  ;;  %v41_v30 = vld [vmem:[%s2575_s0 + $0x90] sm:$0xff] }
  0x54   :  { %554 = vmatmul.mubr.f32.gmra.mrb[22].mxu1 %v102_v3  ;;  %413 = vmatprep.mubr.f32.mxu0 %v108_v4  ;;  %v35_v24 = vld [vmem:[%s2575_s0 + $0x60] sm:$0xff]  ;;  %v42_v28 = vld [vmem:[%s2575_s0 + $0x98] sm:$0xff]  ;;  %v125_v31 = vld [vmem:[%s2575_s0 + $0x330] sm:$0xff]  ;;  %v1733_v4 = vmov 0  }
  0x55   :  { %558 = vmatprep.mubr.f32.mxu1 %v110_v5  ;;  %v119_v25 = vld [vmem:[%s2575_s0 + $0x300] sm:$0xff]  ;;  %v126_v29 = vld [vmem:[%s2575_s0 + $0x338] sm:$0xff]  ;;  %v49_v32 = vld [vmem:[%s2575_s0 + $0xd0] sm:$0xff]  ;;  %1643 = vset.pattern.permute.xlu1 %v1733_v4 }
  0x56   :  { %v133_v33 = vld [vmem:[%s2575_s0 + $0x370] sm:$0xff]  ;;  %v48_v34 = vld [vmem:[%s2575_s0 + $0xc8] sm:$0xff]  ;;  %v55_v38 = vld [vmem:[%s2575_s0 + $0x100] sm:$0xff]  ;;  %1644 = vset.pattern.permute.xlu0 %v1733_v4 }
  0x57   :  { %414 = vmatmul.mubr.f32.gmra.mrb[24].mxu0 %v107_v6  ;;  %v132_v35 = vld [vmem:[%s2575_s0 + $0x368] sm:$0xff]  ;;  %v29_v37 = vld [vmem:[%s2575_s0 + $0x30] sm:$0xff]  ;;  %v63_v40 = vld [vmem:[%s2575_s0 + $0x140] sm:$0xff] }
  0x58   :  { %559 = vmatmul.mubr.f32.gmra.mrb[24].mxu1 %v109_v7  ;;  %418 = vmatprep.mubr.f32.mxu0 %v115_v8  ;;  %v56_v36 = vld [vmem:[%s2575_s0 + $0x108] sm:$0xff]  ;;  %v43_v41 = vld [vmem:[%s2575_s0 + $0xa0] sm:$0xff]  ;;  %v62_v42 = vld [vmem:[%s2575_s0 + $0x138] sm:$0xff] }
  0x59   :  { %563 = vmatprep.mubr.f32.mxu1 %v117_v9  ;;  %v36_v39 = vld [vmem:[%s2575_s0 + $0x68] sm:$0xff]  ;;  %v50_v43 = vld [vmem:[%s2575_s0 + $0xd8] sm:$0xff]  ;;  %v57_v45 = vld [vmem:[%s2575_s0 + $0x110] sm:$0xff] }
  0x5a   :  { %v70_v44 = vld [vmem:[%s2575_s0 + $0x178] sm:$0xff]  ;;  %v69_v46 = vld [vmem:[%s2575_s0 + $0x170] sm:$0xff]  ;;  %v64_v47 = vld [vmem:[%s2575_s0 + $0x148] sm:$0xff] }
  0x5b   :  { %419 = vmatmul.mubr.f32.gmra.mrb[26].mxu0 %v114_v10  ;;  %v77_v48 = vld [vmem:[%s2575_s0 + $0x1b0] sm:$0xff]  ;;  %v71_v49 = vld [vmem:[%s2575_s0 + $0x180] sm:$0xff]  ;;  %v76_v50 = vld [vmem:[%s2575_s0 + $0x1a8] sm:$0xff] }
  0x5c   :  { %564 = vmatmul.mubr.f32.gmra.mrb[26].mxu1 %v116_v11  ;;  %423 = vmatprep.mubr.f32.mxu0 %v122_v12  ;;  %v78_v51 = vld [vmem:[%s2575_s0 + $0x1b8] sm:$0xff]  ;;  %v84_v52 = vld [vmem:[%s2575_s0 + $0x1e8] sm:$0xff]  ;;  %v83_v54 = vld [vmem:[%s2575_s0 + $0x1e0] sm:$0xff] }
  0x5d   :  { %568 = vmatprep.mubr.f32.mxu1 %v124_v13  ;;  %v92_v55 = vld [vmem:[%s2575_s0 + $0x228] sm:$0xff]  ;;  %v91_v56 = vld [vmem:[%s2575_s0 + $0x220] sm:$0xff]  ;;  %v90_v58 = vld [vmem:[%s2575_s0 + $0x218] sm:$0xff] }
  0x5e   :  { %v99_v57 = vld [vmem:[%s2575_s0 + $0x260] sm:$0xff]  ;;  %v106_v59 = vld [vmem:[%s2575_s0 + $0x298] sm:$0xff]  ;;  %v113_v61 = vld [vmem:[%s2575_s0 + $0x2d0] sm:$0xff] }
  0x5f   :  { %424 = vmatmul.mubr.f32.gmra.mrb[28].mxu0 %v121_v14  ;;  %v98_v60 = vld [vmem:[%s2575_s0 + $0x258] sm:$0xff]  ;;  %v97_v62 = vld [vmem:[%s2575_s0 + $0x250] sm:$0xff]  ;;  %v120_v63 = vld [vmem:[%s2575_s0 + $0x308] sm:$0xff] }
  0x60   :  { %569 = vmatmul.mubr.f32.gmra.mrb[28].mxu1 %v123_v15  ;;  %428 = vmatprep.mubr.f32.mxu0 %v129_v16  ;;  %v105_v0 = vld [vmem:[%s2575_s0 + $0x290] sm:$0xff]  ;;  %v127_v1 = vld [vmem:[%s2575_s0 + $0x340] sm:$0xff]  ;;  %v104_v2 = vld [vmem:[%s2575_s0 + $0x288] sm:$0xff] }
  0x61   :  { %573 = vmatprep.mubr.f32.mxu1 %v131_v17  ;;  %v134_v3 = vld [vmem:[%s2575_s0 + $0x378] sm:$0xff]  ;;  %v2421_v7 = vld [vmem:[%s2577_s2] ss:$0 sm:$0xff] }
  0x63   :  { %429 = vmatmul.mubr.f32.gmra.mrb[30].mxu0 %v128_v18 }
  0x64   :  { %574 = vmatmul.mubr.f32.gmra.mrb[30].mxu1 %v130_v19  ;;  %643 = vmatprep.mubr.f32.mxu0 %v28_v20 }
  0x65   :  { %703 = vmatprep.mubr.f32.mxu1 %v112_v21 }
  0x67   :  { %644 = vmatmul.mubr.f32.vlgmr.msra.gmra.mrb[32].mxu0 %v27_v22 }
  0x68   :  { %704 = vmatmul.mubr.f32.vlgmr.msra.gmra.mrb[32].mxu1 %v111_v23  ;;  %648 = vmatprep.mubr.f32.mxu0 %v35_v24 }
  0x69   :  { %1624 = vmatpush3.bf16.msra.mxu1 %v2164_v53  ;;  %708 = vmatprep.mubr.f32.mxu1 %v119_v25  ;;  %v85_v53 = vld [vmem:[%s2575_s0 + $0x1f0] sm:$0xff] }
  0x6b   :  { %649 = vmatmul.mubr.f32.gmra.mrb[34].mxu0 %v34_v26 }
  0x6c   :  { %709 = vmatmul.mubr.f32.gmra.mrb[34].mxu1 %v118_v27  ;;  %653 = vmatprep.mubr.f32.mxu0 %v42_v28 }
  0x6d   :  { %713 = vmatprep.mubr.f32.mxu1 %v126_v29 }
  0x6f   :  { %654 = vmatmul.mubr.f32.gmra.mrb[36].mxu0 %v41_v30 }
  0x70   :  { %714 = vmatmul.mubr.f32.gmra.mrb[36].mxu1 %v125_v31  ;;  %658 = vmatprep.mubr.f32.mxu0 %v49_v32 }
  0x71   :  { %718 = vmatprep.mubr.f32.mxu1 %v133_v33 }
  0x73   :  { %659 = vmatmul.mubr.f32.gmra.mrb[38].mxu0 %v48_v34 }
  0x74   :  { %719 = vmatmul.mubr.f32.gmra.mrb[38].mxu1 %v132_v35  ;;  %663 = vmatprep.mubr.f32.mxu0 %v56_v36 }
  0x75   :  { %1501 = vmatprep.mubr.msk.f32.mxu1 %vm240_vm0, %v29_v37 }
  0x77   :  { %664 = vmatmul.mubr.f32.gmra.mrb[40].mxu0 %v55_v38 }
  0x78   :  { %1502 = vmatmul.mubr.msk.f32.vlgmr.msra.gmra.mrb[40].mxu1 %vm240_vm0, %v36_v39  ;;  %668 = vmatprep.mubr.f32.mxu0 %v63_v40 }
  0x79   :  { %1504 = vmatprep.mubr.msk.f32.mxu1 %vm240_vm0, %v43_v41 }
  0x7b   :  { %669 = vmatmul.mubr.f32.gmra.mrb[42].mxu0 %v62_v42 }
  0x7c   :  { %1505 = vmatmul.mubr.msk.f32.gmra.mrb[42].mxu1 %vm240_vm0, %v50_v43  ;;  %673 = vmatprep.mubr.f32.mxu0 %v70_v44 }
  0x7d   :  { %1507 = vmatprep.mubr.msk.f32.mxu1 %vm240_vm0, %v57_v45 }
  0x7f   :  { %674 = vmatmul.mubr.f32.gmra.mrb[44].mxu0 %v69_v46 }
  0x80   :  { %1508 = vmatmul.mubr.msk.f32.gmra.mrb[44].mxu1 %vm240_vm0, %v64_v47  ;;  %678 = vmatprep.mubr.f32.mxu0 %v77_v48 }
  0x81   :  { %1510 = vmatprep.mubr.msk.f32.mxu1 %vm240_vm0, %v71_v49 }
  0x83   :  { %679 = vmatmul.mubr.f32.gmra.mrb[46].mxu0 %v76_v50 }
  0x84   :  { %1511 = vmatmul.mubr.msk.f32.gmra.mrb[46].mxu1 %vm240_vm0, %v78_v51  ;;  %683 = vmatprep.mubr.f32.mxu0 %v84_v52 }
  0x85   :  { %1513 = vmatprep.mubr.msk.f32.mxu1 %vm240_vm0, %v85_v53 }
  0x87   :  { %684 = vmatmul.mubr.f32.gmra.mrb[48].mxu0 %v83_v54 }
  0x88   :  { %1514 = vmatmul.mubr.msk.f32.gmra.mrb[48].mxu1 %vm240_vm0, %v92_v55  ;;  %688 = vmatprep.mubr.f32.mxu0 %v91_v56 }
  0x89   :  { %1516 = vmatprep.mubr.msk.f32.mxu1 %vm240_vm0, %v99_v57 }
  0x8b   :  { %689 = vmatmul.mubr.f32.gmra.mrb[50].mxu0 %v90_v58 }
  0x8c   :  { %1517 = vmatmul.mubr.msk.f32.gmra.mrb[50].mxu1 %vm240_vm0, %v106_v59  ;;  %693 = vmatprep.mubr.f32.mxu0 %v98_v60 }
  0x8d   :  { %1519 = vmatprep.mubr.msk.f32.mxu1 %vm240_vm0, %v113_v61 }
  0x8f   :  { %694 = vmatmul.mubr.f32.gmra.mrb[52].mxu0 %v97_v62 }
  0x90   :  { %1520 = vmatmul.mubr.msk.f32.gmra.mrb[52].mxu1 %vm240_vm0, %v120_v63  ;;  %698 = vmatprep.mubr.f32.mxu0 %v105_v0 }
  0x91   :  { %1522 = vmatprep.mubr.msk.f32.mxu1 %vm240_vm0, %v127_v1 }
  0x93   :  { %699 = vmatmul.mubr.f32.gmra.mrb[54].mxu0 %v104_v2 }
  0x94   :  { %1523 = vmatmul.mubr.msk.f32.gmra.mrb[54].mxu1 %vm240_vm0, %v134_v3 }
  0xfa   :  { %v1271_v5 = vpop.f32.mrb[0].mxu0 }
  0xfb   :  { %v1351_v6 = vpop.f32.mrb[0].mxu1  ;;  %v1272_v8 = vpop.f32.mrb[1].mxu0 }
  0xfc   :  { %v1273_v9 = vadd.f32 %v1272_v8, %v1271_v5  ;;  %v1352_v10 = vpop.f32.mrb[1].mxu1 }
  0xfd   :  { %v1353_v11 = vadd.f32 %v1352_v10, %v1351_v6 }
  0xfe   :  { %v356_v12 = vadd.f32 %v1273_v9, %v2421_v7  ;;  %v1274_v13 = vpop.f32.mrb[2].mxu0 }
  0xff   :  { %v1354_v14 = vpop.f32.mrb[2].mxu1  ;;  %v1275_v15 = vpop.f32.mrb[3].mxu0 }
 0x100   :  { %v2424_v16 = vadd.f32 %v1353_v11, %v356_v12  ;;  %v1276_v17 = vadd.f32 %v1275_v15, %v1274_v13  ;;  %v1355_v18 = vpop.f32.mrb[3].mxu1 }
 0x101   :  { %v1356_v19 = vadd.f32 %v1355_v18, %v1354_v14 }
 0x102   :  { %v361_v20 = vadd.f32 %v1276_v17, %v2421_v7  ;;  %v1277_v21 = vpop.f32.mrb[4].mxu0 }
 0x103   :  { %v1357_v22 = vpop.f32.mrb[4].mxu1  ;;  %v1278_v23 = vpop.f32.mrb[5].mxu0 }
 0x104   :  { %v2427_v24 = vadd.f32 %v1356_v19, %v361_v20  ;;  %v1279_v25 = vadd.f32 %v1278_v23, %v1277_v21  ;;  %v1358_v26 = vpop.f32.mrb[5].mxu1 }
 0x105   :  { %v1359_v27 = vadd.f32 %v1358_v26, %v1357_v22 }
 0x106   :  { %v366_v28 = vadd.f32 %v1279_v25, %v2421_v7  ;;  %v1280_v29 = vpop.f32.mrb[6].mxu0 }
 0x107   :  { %v1360_v30 = vpop.f32.mrb[6].mxu1  ;;  %v1281_v31 = vpop.f32.mrb[7].mxu0 }
 0x108   :  { %v2430_v32 = vadd.f32 %v1359_v27, %v366_v28  ;;  %v1282_v33 = vadd.f32 %v1281_v31, %v1280_v29  ;;  %v1361_v34 = vpop.f32.mrb[7].mxu1 }
 0x109   :  { %v1362_v35 = vadd.f32 %v1361_v34, %v1360_v30 }
 0x10a   :  { %v371_v36 = vadd.f32 %v1282_v33, %v2421_v7  ;;  %v1283_v37 = vpop.f32.mrb[8].mxu0 }
 0x10b   :  { %v1363_v38 = vpop.f32.mrb[8].mxu1  ;;  %v1284_v39 = vpop.f32.mrb[9].mxu0 }
 0x10c   :  { %v2433_v40 = vadd.f32 %v1362_v35, %v371_v36  ;;  %v1285_v41 = vadd.f32 %v1284_v39, %v1283_v37  ;;  %v1364_v42 = vpop.f32.mrb[9].mxu1 }
 0x10d   :  { %v1365_v43 = vadd.f32 %v1364_v42, %v1363_v38 }
 0x10e   :  { %v376_v44 = vadd.f32 %v1285_v41, %v2421_v7  ;;  %v1286_v45 = vpop.f32.mrb[10].mxu0 }
 0x10f   :  { %v1366_v46 = vpop.f32.mrb[10].mxu1  ;;  %v1287_v47 = vpop.f32.mrb[11].mxu0 }
 0x110   :  { %v2436_v48 = vadd.f32 %v1365_v43, %v376_v44  ;;  %v1288_v49 = vadd.f32 %v1287_v47, %v1286_v45  ;;  %v1367_v50 = vpop.f32.mrb[11].mxu1 }
 0x111   :  { %v1368_v51 = vadd.f32 %v1367_v50, %v1366_v46 }
 0x112   :  { %v381_v52 = vadd.f32 %v1288_v49, %v2421_v7  ;;  %v1289_v53 = vpop.f32.mrb[12].mxu0 }
 0x113   :  { %v1369_v54 = vpop.f32.mrb[12].mxu1  ;;  %v1290_v55 = vpop.f32.mrb[13].mxu0 }
 0x114   :  { %v2439_v56 = vadd.f32 %v1368_v51, %v381_v52  ;;  %v1291_v57 = vadd.f32 %v1290_v55, %v1289_v53  ;;  %v1370_v58 = vpop.f32.mrb[13].mxu1 }
 0x115   :  { %v1371_v59 = vadd.f32 %v1370_v58, %v1369_v54 }
 0x116   :  { %v386_v60 = vadd.f32 %v1291_v57, %v2421_v7  ;;  %v1292_v61 = vpop.f32.mrb[14].mxu0 }
 0x117   :  { %v1372_v62 = vpop.f32.mrb[14].mxu1  ;;  %v1293_v63 = vpop.f32.mrb[15].mxu0 }
 0x118   :  { %v2442_v0 = vadd.f32 %v1371_v59, %v386_v60  ;;  %v1294_v1 = vadd.f32 %v1293_v63, %v1292_v61  ;;  %v1373_v2 = vpop.f32.mrb[15].mxu1 }
 0x119   :  { %v1374_v3 = vadd.f32 %v1373_v2, %v1372_v62 }
 0x11a   :  { %v391_v4 = vadd.f32 %v1294_v1, %v2421_v7  ;;  %v1295_v5 = vpop.f32.mrb[16].mxu0 }
 0x11b   :  { %v1375_v6 = vpop.f32.mrb[16].mxu1  ;;  %v1296_v8 = vpop.f32.mrb[17].mxu0 }
 0x11c   :  { %v2445_v9 = vadd.f32 %v1374_v3, %v391_v4  ;;  %v1297_v10 = vadd.f32 %v1296_v8, %v1295_v5  ;;  %v1376_v11 = vpop.f32.mrb[17].mxu1 }
 0x11d   :  { %v1377_v12 = vadd.f32 %v1376_v11, %v1375_v6 }
 0x11e   :  { %v396_v13 = vadd.f32 %v1297_v10, %v2421_v7  ;;  %v1298_v14 = vpop.f32.mrb[18].mxu0 }
 0x11f   :  { %v1378_v15 = vpop.f32.mrb[18].mxu1  ;;  %v1299_v17 = vpop.f32.mrb[19].mxu0 }
 0x120   :  { %v2448_v18 = vadd.f32 %v1377_v12, %v396_v13  ;;  %v1300_v19 = vadd.f32 %v1299_v17, %v1298_v14  ;;  %v1379_v20 = vpop.f32.mrb[19].mxu1 }
 0x121   :  { %v1380_v21 = vadd.f32 %v1379_v20, %v1378_v15 }
 0x122   :  { %v401_v22 = vadd.f32 %v1300_v19, %v2421_v7  ;;  %v1301_v23 = vpop.f32.mrb[20].mxu0 }
 0x123   :  { %v1381_v25 = vpop.f32.mrb[20].mxu1  ;;  %v1302_v26 = vpop.f32.mrb[21].mxu0 }
 0x124   :  { %v2451_v27 = vadd.f32 %v1380_v21, %v401_v22  ;;  %v1303_v28 = vadd.f32 %v1302_v26, %v1301_v23  ;;  %v1382_v29 = vpop.f32.mrb[21].mxu1 }
 0x125   :  { %v1383_v30 = vadd.f32 %v1382_v29, %v1381_v25 }
 0x126   :  { %v406_v31 = vadd.f32 %v1303_v28, %v2421_v7  ;;  %v1304_v33 = vpop.f32.mrb[22].mxu0 }
 0x127   :  { %v1384_v34 = vpop.f32.mrb[22].mxu1  ;;  %v1305_v35 = vpop.f32.mrb[23].mxu0 }
 0x128   :  { %v2454_v36 = vadd.f32 %v1383_v30, %v406_v31  ;;  %v1306_v37 = vadd.f32 %v1305_v35, %v1304_v33  ;;  %v1385_v38 = vpop.f32.mrb[23].mxu1 }
 0x129   :  { %v1386_v39 = vadd.f32 %v1385_v38, %v1384_v34 }
 0x12a   :  { %v411_v41 = vadd.f32 %v1306_v37, %v2421_v7  ;;  %v1307_v42 = vpop.f32.mrb[24].mxu0 }
 0x12b   :  { %v1387_v43 = vpop.f32.mrb[24].mxu1  ;;  %v1308_v44 = vpop.f32.mrb[25].mxu0 }
 0x12c   :  { %v2457_v45 = vadd.f32 %v1386_v39, %v411_v41  ;;  %v1309_v46 = vadd.f32 %v1308_v44, %v1307_v42  ;;  %v1388_v47 = vpop.f32.mrb[25].mxu1 }
 0x12d   :  { %v1389_v49 = vadd.f32 %v1388_v47, %v1387_v43 }
 0x12e   :  { %v416_v50 = vadd.f32 %v1309_v46, %v2421_v7  ;;  %v1310_v51 = vpop.f32.mrb[26].mxu0 }
 0x12f   :  { %v1390_v52 = vpop.f32.mrb[26].mxu1  ;;  %v1311_v53 = vpop.f32.mrb[27].mxu0 }
 0x130   :  { %v561_v54 = vadd.f32 %v1389_v49, %v416_v50  ;;  %v1312_v55 = vadd.f32 %v1311_v53, %v1310_v51  ;;  %v1391_v57 = vpop.f32.mrb[27].mxu1 }
 0x131   :  { %v1392_v58 = vadd.f32 %v1391_v57, %v1390_v52 }
 0x132   :  { %v421_v59 = vadd.f32 %v1312_v55, %v2421_v7  ;;  %v1313_v60 = vpop.f32.mrb[28].mxu0 }
 0x133   :  { %v1393_v61 = vpop.f32.mrb[28].mxu1  ;;  %v1314_v62 = vpop.f32.mrb[29].mxu0 }
 0x134   :  { %v566_v63 = vadd.f32 %v1392_v58, %v421_v59  ;;  %v1315_v1 = vadd.f32 %v1314_v62, %v1313_v60  ;;  %v1394_v2 = vpop.f32.mrb[29].mxu1 }
 0x135   :  { %v1395_v3 = vadd.f32 %v1394_v2, %v1393_v61 }
 0x136   :  { %v426_v4 = vadd.f32 %v1315_v1, %v2421_v7  ;;  %v1316_v5 = vpop.f32.mrb[30].mxu0 }
 0x137   :  { %v1396_v6 = vpop.f32.mrb[30].mxu1  ;;  %v1317_v8 = vpop.f32.mrb[31].mxu0 }
 0x138   :  { %v571_v10 = vadd.f32 %v1395_v3, %v426_v4  ;;  %v1318_v11 = vadd.f32 %v1317_v8, %v1316_v5  ;;  %v1397_v12 = vpop.f32.mrb[31].mxu1  ;;  %v2479_v4 = vld [vmem:[%s2578_s3] ss:$0 sm:$0xff]  ;;  %s1734_s3 = smov [#allocation3]  }
 0x139   :  { %v1398_v13 = vadd.f32 %v1397_v12, %v1396_v6  ;;  %s1213_s20 = sshll.u32 %s1734_s3, 4  ;;  %s1214_s20 = int_to_ptr.vmem [resolvable:$true] %s1213_s20 }
 0x13a   :  { %v431_v14 = vadd.f32 %v1318_v11, %v2421_v7  ;;  %v1431_v15 = vpop.f32.mrb[32].mxu0  ;;  %s1709_s21 = scalar_lea.vmem %s1214_s20, 16  ;;  %s1713_s22 = scalar_lea.vmem %s1214_s20, 32 }
 0x13b   :  { %v1467_v17 = vpop.f32.mrb[32].mxu1  ;;  %v1432_v19 = vpop.f32.mrb[33].mxu0  ;;  %p1710_p0 = scmp.ne.s32.totalorder %s1214_s20, %s1709_s21  ;;  %p1714_p1 = scmp.lt.s32.totalorder %s1214_s20, %s1214_s20 }
 0x13c   :  { %v576_v20 = vadd.f32 %v1398_v13, %v431_v14  ;;  %v1433_v21 = vadd.f32 %v1432_v19, %v1431_v15  ;;  %v1468_v22 = vpop.f32.mrb[33].mxu1  ;;  %p1715_p2 = scmp.lt.s32.totalorder %s1713_s22, %s1709_s21 }
 0x13d   :  { %v1469_v23 = vadd.f32 %v1468_v22, %v1467_v17 }
 0x13e   :  { %v1434_v25 = vpop.f32.mrb[34].mxu0  ;;  %v646_v26 = vadd.f32 %v1433_v21, %v2424_v16  ;;  %p1716_p3 = por %p1715_p2, %p1714_p1 }
 0x13f   :  { %v1470_v28 = vpop.f32.mrb[34].mxu1  ;;  %v1435_v29 = vpop.f32.mrb[35].mxu0  ;;  %v2464_v30 = vadd.f32 %v1469_v23, %v561_v54 }
 0x140   :  { %v1436_v31 = vadd.f32 %v1435_v29, %v1434_v25  ;;  %v1471_v33 = vpop.f32.mrb[35].mxu1  ;;  %p1717_p4 = pnand %p1716_p3, %p1710_p0 }
 0x141   :  { %v1472_v34 = vadd.f32 %v1471_v33, %v1470_v28 }
 0x142   :  { %v1437_v35 = vpop.f32.mrb[36].mxu0  ;;  %v651_v7 = vadd.f32 %v1436_v31, %v2427_v24 }
 0x143   :  { %v1473_v37 = vpop.f32.mrb[36].mxu1  ;;  %v1438_v38 = vpop.f32.mrb[37].mxu0  ;;  %v2467_v39 = vadd.f32 %v1472_v34, %v566_v63 }
 0x144   :  { %v1439_v41 = vadd.f32 %v1438_v38, %v1437_v35  ;;  %v1474_v42 = vpop.f32.mrb[37].mxu1 }
 0x145   :  { %v1475_v43 = vadd.f32 %v1474_v42, %v1473_v37 }
 0x146   :  { %v1440_v44 = vpop.f32.mrb[38].mxu0  ;;  %v656_v16 = vadd.f32 %v1439_v41, %v2430_v32 }
 0x147   :  { %v1476_v46 = vpop.f32.mrb[38].mxu1  ;;  %v1441_v47 = vpop.f32.mrb[39].mxu0  ;;  %v2470_v49 = vadd.f32 %v1475_v43, %v571_v10 }
 0x148   :  { %v1442_v50 = vadd.f32 %v1441_v47, %v1440_v44  ;;  %v1477_v51 = vpop.f32.mrb[39].mxu1 }
 0x149   :  { %v1478_v52 = vadd.f32 %v1477_v51, %v1476_v46 }
 0x14a   :  { %v1443_v53 = vpop.f32.mrb[40].mxu0  ;;  %v661_v24 = vadd.f32 %v1442_v50, %v2433_v40 }
 0x14b   :  { %v1503_v54 = vpop.f32.mrb[40].mxu1  ;;  %v1444_v55 = vpop.f32.mrb[41].mxu0  ;;  %v2473_v57 = vadd.f32 %v1478_v52, %v576_v20 }
 0x14c   :  { %v796_v58 = vadd.f32 %v1503_v54, %v651_v7  ;;  %v1445_v59 = vadd.f32 %v1444_v55, %v1443_v53  ;;  %v790_v60 = vpop.f32.mrb[41].mxu1 }
 0x14d   :  { %v791_v61 = vadd.f32 %v790_v60, %v646_v26 }
 0x14e   :  { %v870_v62 = vmul.f32 0.1, %v796_v58  ;;  %v1446_v32 = vpop.f32.mrb[42].mxu0  ;;  %v666_v63 = vadd.f32 %v1445_v59, %v2436_v48 }
 0x14f   :  { %v869_v1 = vmul.f32 0.1, %v791_v61  ;;  %v1506_v2 = vpop.f32.mrb[42].mxu1  ;;  %v1447_v3 = vpop.f32.mrb[43].mxu0 }
 0x150   :  { %v806_v40 = vadd.f32 %v1506_v2, %v661_v24  ;;  %v1448_v5 = vadd.f32 %v1447_v3, %v1446_v32  ;;  %v800_v6 = vpop.f32.mrb[43].mxu1  ;;  %v886_v8 = vmax.f32 %v796_v58, %v870_v62 }
 0x151   :  { %v885_v10 = vmax.f32 %v791_v61, %v869_v1  ;;  %v801_v11 = vadd.f32 %v800_v6, %v656_v16 }
 0x152   :  { %v872_v12 = vmul.f32 0.1, %v806_v40  ;;  %v1449_v13 = vpop.f32.mrb[44].mxu0  ;;  %v671_v14 = vadd.f32 %v1448_v5, %v2439_v56  ;;  %v909_v48 = vmul.f32 %v2479_v4, %v886_v8 }
 0x153   :  { %v871_v15 = vmul.f32 0.1, %v801_v11  ;;  %v1509_v17 = vpop.f32.mrb[44].mxu1  ;;  %v1450_v19 = vpop.f32.mrb[45].mxu0  ;;  %v908_v26 = vmul.f32 %v2479_v4, %v885_v10 }
 0x154   :  { %v816_v20 = vadd.f32 %v1509_v17, %v671_v14  ;;  %v1451_v21 = vadd.f32 %v1450_v19, %v1449_v13  ;;  %v810_v22 = vpop.f32.mrb[45].mxu1  ;;  %926 = vadd.xlane.f32.xlu0 %v909_v48  ;;  %v888_v23 = vmax.f32 %v806_v40, %v872_v12 }
 0x155   :  { %v811_v25 = vadd.f32 %v810_v22, %v666_v63  ;;  %v887_v28 = vmax.f32 %v801_v11, %v871_v15 }
 0x156   :  { %v874_v29 = vmul.f32 0.1, %v816_v20  ;;  %v1452_v31 = vpop.f32.mrb[46].mxu0  ;;  %v676_v33 = vadd.f32 %v1451_v21, %v2442_v0  ;;  %v911_v56 = vmul.f32 %v2479_v4, %v888_v23 }
 0x157   :  { %v873_v34 = vmul.f32 0.1, %v811_v25  ;;  %v1512_v35 = vpop.f32.mrb[46].mxu1  ;;  %v1453_v7 = vpop.f32.mrb[47].mxu0  ;;  %v910_v46 = vmul.f32 %v2479_v4, %v887_v28 }
 0x158   :  { %v1454_v37 = vadd.f32 %v1453_v7, %v1452_v31  ;;  %v820_v38 = vpop.f32.mrb[47].mxu1  ;;  %930 = vadd.xlane.f32.xlu1 %v911_v56  ;;  %924 = vadd.xlane.f32.xlu0 %v908_v26  ;;  %v890_v43 = vmax.f32 %v816_v20, %v874_v29 }
 0x159   :  { %v889_v41 = vmax.f32 %v811_v25, %v873_v34  ;;  %v821_v42 = vadd.f32 %v820_v38, %v676_v33  ;;  %v956_v34 = vld [vmem:[#allocation2] sm:$0x1] }
 0x15a   :  { %v681_v44 = vadd.f32 %v1454_v37, %v2445_v9  ;;  %v1455_v16 = vpop.f32.mrb[48].mxu0  ;;  %v913_v59 = vmul.f32 %v2479_v4, %v890_v43 }
 0x15b   :  { %v875_v47 = vmul.f32 0.1, %v821_v42  ;;  %v1456_v50 = vpop.f32.mrb[49].mxu0  ;;  %v912_v0 = vmul.f32 %v2479_v4, %v889_v41  ;;  %v1515_v51 = vpop.f32.mrb[48].mxu1 }
 0x15c   :  { %v826_v52 = vadd.f32 %v1512_v35, %v681_v44  ;;  %v1457_v53 = vadd.f32 %v1456_v50, %v1455_v16  ;;  %928 = vadd.xlane.f32.xlu1 %v910_v46  ;;  %v830_v24 = vpop.f32.mrb[49].mxu1 }
 0x15d   :  { %v891_v54 = vmax.f32 %v821_v42, %v875_v47  ;;  %932 = vadd.xlane.f32.xlu0 %v912_v0 }
 0x15e   :  { %v1458_v55 = vpop.f32.mrb[50].mxu0  ;;  %v686_v58 = vadd.f32 %v1457_v53, %v2448_v18  ;;  %v876_v9 = vmul.f32 0.1, %v826_v52 }
 0x15f   :  { %v1459_v60 = vpop.f32.mrb[51].mxu0  ;;  %v1518_v61 = vpop.f32.mrb[50].mxu1  ;;  %v914_v62 = vmul.f32 %v2479_v4, %v891_v54  ;;  %v962_v54 = vlaneseq }
 0x160   :  { %v1460_v32 = vadd.f32 %v1459_v60, %v1458_v55  ;;  %v831_v63 = vadd.f32 %v830_v24, %v686_v58  ;;  %934 = vadd.xlane.f32.xlu1 %v913_v59  ;;  %v840_v1 = vpop.f32.mrb[51].mxu1  ;;  %v892_v2 = vmax.f32 %v826_v52, %v876_v9 }
 0x161   :  { %936 = vadd.xlane.f32.xlu0 %v914_v62  ;;  %v2508_v59 = vshrl.u32 %v962_v54, 7 }
 0x162   :  { %v691_v3 = vadd.f32 %v1460_v32, %v2451_v27  ;;  %v877_v40 = vmul.f32 0.1, %v831_v63  ;;  %v1461_v5 = vpop.f32.mrb[52].mxu0  ;;  %v915_v6 = vmul.f32 %v2479_v4, %v892_v2 }
 0x163   :  { %v1521_v18 = vpop.f32.mrb[52].mxu1  ;;  %v1462_v8 = vpop.f32.mrb[53].mxu0  ;;  %v964_v9 = vsub.s32 0, %v2508_v59 }
 0x164   :  { %v836_v10 = vadd.f32 %v1515_v51, %v691_v3  ;;  %v893_v11 = vmax.f32 %v831_v63, %v877_v40  ;;  %v856_v12 = vadd.f32 %v1521_v18, %v2467_v39  ;;  %v1463_v13 = vadd.f32 %v1462_v8, %v1461_v5  ;;  %v850_v14 = vpop.f32.mrb[53].mxu1 }
 0x165   :  { %v851_v48 = vadd.f32 %v850_v14, %v2464_v30  ;;  %938 = vadd.xlane.f32.xlu0 %v915_v6 }
 0x166   :  { %v696_v15 = vadd.f32 %v1463_v13, %v2454_v36  ;;  %v1464_v17 = vpop.f32.mrb[54].mxu0  ;;  %v916_v27 = vmul.f32 %v2479_v4, %v893_v11  ;;  %v878_v19 = vmul.f32 0.1, %v836_v10 }
 0x167   :  { %v1524_v20 = vpop.f32.mrb[54].mxu1  ;;  %v1465_v21 = vpop.f32.mrb[55].mxu0  ;;  %v881_v31 = vmul.f32 0.1, %v851_v48 }
 0x168   :  { %v841_v22 = vadd.f32 %v840_v1, %v696_v15  ;;  %v866_v23 = vadd.f32 %v1524_v20, %v2473_v57  ;;  %v1466_v25 = vadd.f32 %v1465_v21, %v1464_v17  ;;  %v860_v26 = vpop.f32.mrb[55].mxu1  ;;  %v894_v28 = vmax.f32 %v836_v10, %v878_v19 }
 0x169   :  { %v861_v39 = vadd.f32 %v860_v26, %v2470_v49  ;;  %940 = vadd.xlane.f32.xlu0 %v916_v27  ;;  %v882_v57 = vmul.f32 0.1, %v856_v12  ;;  %v897_v37 = vmax.f32 %v851_v48, %v881_v31 }
 0x16a   :  { %v701_v30 = vadd.f32 %v1466_v25, %v2457_v45  ;;  %v879_v29 = vmul.f32 0.1, %v841_v22  ;;  %v917_v36 = vmul.f32 %v2479_v4, %v894_v28  ;;  %v884_v43 = vmul.f32 0.1, %v866_v23 }
 0x16b   :  { %v898_v41 = vmax.f32 %v856_v12, %v882_v57  ;;  %v883_v45 = vmul.f32 0.1, %v861_v39  ;;  %v920_v42 = vmul.f32 %v2479_v4, %v897_v37 }
 0x16c   :  { %v846_v33 = vadd.f32 %v1518_v61, %v701_v30  ;;  %v895_v56 = vmax.f32 %v841_v22, %v879_v29  ;;  %v900_v46 = vmax.f32 %v866_v23, %v884_v43 }
 0x16d   :  { %942 = vadd.xlane.f32.xlu0 %v917_v36  ;;  %v899_v44 = vmax.f32 %v861_v39, %v883_v45  ;;  %v921_v16 = vmul.f32 %v2479_v4, %v898_v41 }
 0x16e   :  { %v918_v35 = vmul.f32 %v2479_v4, %v895_v56  ;;  %v880_v7 = vmul.f32 0.1, %v846_v33  ;;  %v923_v50 = vmul.f32 %v2479_v4, %v900_v46 }
 0x16f   :  { %v922_v47 = vmul.f32 %v2479_v4, %v899_v44  ;;  %v2526_v44 = vand.u32 127, %v962_v54 }
 0x170   :  { %v896_v38 = vmax.f32 %v846_v33, %v880_v7 }
 0x171   :  { %959 = vperm.xlu1 %1643, %v956_v34   ;;  %944 = vadd.xlane.f32.xlu0 %v918_v35 }
 0x172   :  { %v919_v49 = vmul.f32 %v2479_v4, %v896_v38 }
 0x175   :  { %948 = vadd.xlane.f32.xlu0 %v920_v42 }
 0x179   :  { %950 = vadd.xlane.f32.xlu0 %v921_v16 }
 0x17d   :  { %952 = vadd.xlane.f32.xlu0 %v922_v47 }
 0x181   :  { %954 = vadd.xlane.f32.xlu0 %v923_v50 }
 0x195   :  { %946 = vadd.xlane.f32.xlu1 %v919_v49 }
 0x1e1   :  { %v927_v0 = vpop.xlane.xlu0 %926 }
 0x1e5   :  { %v931_v51 = vpop.xlane.xlu1 %930  ;;  %v925_v52 = vpop.xlane.xlu0 %924 }
 0x1e9   :  { %v929_v53 = vpop.xlane.xlu1 %928 }
 0x1ea   :  { %v933_v24 = vpop.xlane.xlu0 %932 }
 0x1ed   :  { %v935_v55 = vpop.xlane.xlu1 %934 }
 0x1ee   :  { %v937_v58 = vpop.xlane.xlu0 %936 }
 0x1f1   :  { %v960_v61 = vpop.permute.xlu1 %959 }
 0x1f2   :  { %v939_v60 = vpop.xlane.xlu0 %938  ;;  %v2511_v62 = vrot.slane %v960_v61, %v964_v9 }
 0x1f4   :  { %v966_v63 = vadd.f32 %v2511_v62, %v925_v52  ;;  %v967_v1 = vadd.f32 %v2511_v62, %v927_v0  ;;  %v968_v2 = vadd.f32 %v2511_v62, %v929_v53  ;;  %v969_v8 = vadd.f32 %v2511_v62, %v931_v51 }
 0x1f5   :  { %v970_v12 = vadd.f32 %v2511_v62, %v933_v24  ;;  %v971_v48 = vadd.f32 %v2511_v62, %v935_v55  ;;  %v972_v15 = vadd.f32 %v2511_v62, %v937_v58  ;;  %v973_v21 = vadd.f32 %v2511_v62, %v939_v60 }
 0x1f6   :  { %v941_v32 = vpop.xlane.xlu0 %940  ;;  %v982_v3 = vsub.f32 0.0, %v966_v63  ;;  %v983_v40 = vsub.f32 0.0, %v967_v1  ;;  %v984_v6 = vsub.f32 0.0, %v968_v2  ;;  %v985_v14 = vsub.f32 0.0, %v969_v8 }
 0x1f7   :  { %v986_v17 = vsub.f32 0.0, %v970_v12  ;;  %v987_v20 = vsub.f32 0.0, %v971_v48  ;;  %v988_v22 = vsub.f32 0.0, %v972_v15  ;;  %v974_v39 = vadd.f32 %v2511_v62, %v941_v32 }
 0x1f8   :  { %v998_v18 = vmul.f32 1.442695, %v982_v3  ;;  %v1000_v10 = vmul.f32 1.442695, %v983_v40  ;;  %v1002_v13 = vmul.f32 1.442695, %v984_v6  ;;  %v1098_v3 = vsub.s32 %v2526_v44, %v2508_v59 }
 0x1f9   :  { %v1004_v27 = vmul.f32 1.442695, %v985_v14  ;;  %v1006_v23 = vmul.f32 1.442695, %v986_v17  ;;  %v1008_v28 = vmul.f32 1.442695, %v987_v20 }
 0x1fa   :  { %v943_v4 = vpop.xlane.xlu0 %942  ;;  %1645 = vpow2.f32 %v998_v18  ;;  %v989_v30 = vsub.f32 0.0, %v973_v21  ;;  %v1010_v36 = vmul.f32 1.442695, %v988_v22  ;;  %v990_v7 = vsub.f32 0.0, %v974_v39 }
 0x1fb   :  { %1647 = vpow2.f32 %v1000_v10  ;;  %v975_v29 = vadd.f32 %v2511_v62, %v943_v4  ;;  %v1100_v58 = vadd.s32 4294967288, %v2526_v44  ;;  %v1107_v63 = vadd.s32 4294967280, %v2526_v44 }
 0x1fc   :  { %1649 = vpow2.f32 %v1002_v13  ;;  %v1012_v57 = vmul.f32 1.442695, %v989_v30  ;;  %v1014_v16 = vmul.f32 1.442695, %v990_v7  ;;  %v1114_v14 = vadd.s32 4294967272, %v2526_v44 }
 0x1fd   :  { %1651 = vpow2.f32 %v1004_v27  ;;  %v991_v37 = vsub.f32 0.0, %v975_v29  ;;  %v1103_v40 = vsub.s32 %v1100_v58, %v2508_v59  ;;  %v1110_v13 = vsub.s32 %v1107_v63, %v2508_v59 }
 0x1fe   :  { %v945_v5 = vpop.xlane.xlu0 %944  ;;  %1653 = vpow2.f32 %v1006_v23  ;;  %v1117_v39 = vsub.s32 %v1114_v14, %v2508_v59  ;;  %v1149_v58 = vadd.s32 4294967232, %v2526_v44 }
 0x1ff   :  { %v976_v33 = vadd.f32 %v2511_v62, %v945_v5  ;;  %1655 = vpow2.f32 %v1008_v28  ;;  %v1016_v47 = vmul.f32 1.442695, %v991_v37  ;;  %v1142_v37 = vadd.s32 4294967240, %v2526_v44 }
 0x200   :  { %1657 = vpow2.f32 %v1010_v36 }
 0x201   :  { %v992_v49 = vsub.f32 0.0, %v976_v33 }
 0x202   :  { %v949_v11 = vpop.xlane.xlu0 %948 }
 0x203   :  { %v978_v38 = vadd.f32 %v2511_v62, %v949_v11  ;;  %v1018_v0 = vmul.f32 1.442695, %v992_v49 }
 0x204   :  { %v1646_v25 = vpop.eup %1645 }
 0x205   :  { %v1648_v26 = vpop.eup %1647  ;;  %v1030_v56 = vadd.f32 1.0, %v1646_v25  ;;  %v994_v50 = vsub.f32 0.0, %v978_v38  ;;  %v1135_v38 = vadd.s32 4294967248, %v2526_v44 }
 0x206   :  { %v951_v19 = vpop.xlane.xlu0 %950  ;;  %v1650_v34 = vpop.eup %1649  ;;  %v1031_v35 = vadd.f32 1.0, %v1648_v26 }
 0x207   :  { %v1032_v41 = vadd.f32 1.0, %v1650_v34  ;;  %1659 = vrcp.f32 %v1030_v56  ;;  %v979_v45 = vadd.f32 %v2511_v62, %v951_v19  ;;  %v1652_v43 = vpop.eup %1651  ;;  %v1022_v54 = vmul.f32 1.442695, %v994_v50 }
 0x208   :  { %1661 = vrcp.f32 %v1031_v35  ;;  %v1654_v52 = vpop.eup %1653  ;;  %v1033_v24 = vadd.f32 1.0, %v1652_v43 }
 0x209   :  { %1663 = vpow2.f32 %v1012_v57  ;;  %v995_v53 = vsub.f32 0.0, %v979_v45  ;;  %v1656_v9 = vpop.eup %1655  ;;  %v1034_v61 = vadd.f32 1.0, %v1654_v52 }
 0x20a   :  { %v953_v31 = vpop.xlane.xlu0 %952  ;;  %1665 = vrcp.f32 %v1032_v41  ;;  %v1658_v32 = vpop.eup %1657  ;;  %v1035_v18 = vadd.f32 1.0, %v1656_v9 }
 0x20b   :  { %v980_v46 = vadd.f32 %v2511_v62, %v953_v31  ;;  %1667 = vpow2.f32 %v1014_v16  ;;  %v1024_v4 = vmul.f32 1.442695, %v995_v53  ;;  %v1036_v12 = vadd.f32 1.0, %v1658_v32 }
 0x20c   :  { %1669 = vpow2.f32 %v1016_v47  ;;  %v1128_v31 = vadd.s32 4294967256, %v2526_v44  ;;  %v1145_v53 = vsub.s32 %v1142_v37, %v2508_v59 }
 0x20d   :  { %v996_v55 = vsub.f32 0.0, %v980_v46  ;;  %1671 = vpow2.f32 %v1018_v0 }
 0x20e   :  { %v955_v42 = vpop.xlane.xlu0 %954  ;;  %1673 = vrcp.f32 %v1033_v24  ;;  %v1131_v45 = vsub.s32 %v1128_v31, %v2508_v59 }
 0x20f   :  { %v981_v51 = vadd.f32 %v2511_v62, %v955_v42  ;;  %v1026_v2 = vmul.f32 1.442695, %v996_v55  ;;  %1675 = vpow2.f32 %v1022_v54 }
 0x210   :  { %1677 = vrcp.f32 %v1034_v61 }
 0x211   :  { %v997_v60 = vsub.f32 0.0, %v981_v51  ;;  %v1660_v1 = vpop.eup %1659  ;;  %1679 = vpow2.f32 %v1024_v4  ;;  %v1138_v51 = vsub.s32 %v1135_v38, %v2508_v59  ;;  %v1163_v4 = vadd.s32 4294967216, %v2526_v44 }
 0x212   :  { %v1662_v5 = vpop.eup %1661  ;;  %1681 = vpow2.f32 %v1026_v2  ;;  %v1099_v17 = vrot.slane %v1660_v1, %v1098_v3  ;;  %v1152_v1 = vsub.s32 %v1149_v58, %v2508_v59 }
 0x213   :  { %v1028_v8 = vmul.f32 1.442695, %v997_v60  ;;  %v1664_v11 = vpop.eup %1663  ;;  %v1104_v27 = vrot.slane %v1662_v5, %v1103_v40  ;;  %1683 = vrcp.f32 %v1035_v18  ;;  %v1156_v60 = vadd.s32 4294967224, %v2526_v44 }
 0x214   :  { %v1666_v48 = vpop.eup %1665  ;;  %v1037_v22 = vadd.f32 1.0, %v1664_v11 }
 0x215   :  { %v1668_v19 = vpop.eup %1667  ;;  %1685 = vpow2.f32 %v1028_v8  ;;  %v1111_v23 = vrot.slane %v1666_v48, %v1110_v13  ;;  %v1106_v26 = vsel %vm1105_vm1, %v1104_v27, %v1099_v17  ;;  %v1159_v5 = vsub.s32 %v1156_v60, %v2508_v59 }
 0x216   :  { %v1670_v21 = vpop.eup %1669  ;;  %1687 = vrcp.f32 %v1036_v12  ;;  %v1038_v30 = vadd.f32 1.0, %v1668_v19  ;;  %v1166_v8 = vsub.s32 %v1163_v4, %v2508_v59  ;;  %v1184_v13 = vadd.s32 4294967192, %v2526_v44 }
 0x217   :  { %v1672_v25 = vpop.eup %1671  ;;  %v1039_v33 = vadd.f32 1.0, %v1670_v21  ;;  %v1113_v56 = vsel %vm1112_vm2, %v1111_v23, %v1106_v26  ;;  %v1191_v48 = vadd.s32 4294967184, %v2526_v44  ;;  %v1198_v27 = vadd.s32 4294967176, %v2526_v44 }
 0x218   :  { %v1674_v28 = vpop.eup %1673  ;;  %v1040_v35 = vadd.f32 1.0, %v1672_v25  ;;  %v1187_v23 = vsub.s32 %v1184_v13, %v2508_v59 }
 0x219   :  { %v1676_v36 = vpop.eup %1675  ;;  %v1118_v7 = vrot.slane %v1674_v28, %v1117_v39  ;;  %v1194_v26 = vsub.s32 %v1191_v48, %v2508_v59 }
 0x21a   :  { %v1678_v34 = vpop.eup %1677  ;;  %v1042_v43 = vadd.f32 1.0, %v1676_v36 }
 0x21b   :  { %v1680_v57 = vpop.eup %1679  ;;  %v1120_v41 = vsel %vm1119_vm3, %v1118_v7, %v1113_v56 }
 0x21c   :  { %v1682_v49 = vpop.eup %1681  ;;  %v1043_v47 = vadd.f32 1.0, %v1680_v57 }
 0x21d   :  { %v1684_v42 = vpop.eup %1683  ;;  %v1044_v24 = vadd.f32 1.0, %v1682_v49 }
 0x21e   :  { %v1132_v55 = vrot.slane %v1684_v42, %v1131_v45 }
 0x21f   :  { %v1686_v46 = vpop.eup %1685 }
 0x220   :  { %v1688_v50 = vpop.eup %1687  ;;  %v1045_v54 = vadd.f32 1.0, %v1686_v46 }
 0x221   :  { %v1139_v63 = vrot.slane %v1688_v50, %v1138_v51 }
 0x222   :  { %v947_v6 = vpop.xlane.xlu1 %946 }
 0x223   :  { %v977_v10 = vadd.f32 %v2511_v62, %v947_v6  ;;  %v1121_v62 = vadd.s32 4294967264, %v2526_v44  ;;  %v1170_v6 = vadd.s32 4294967208, %v2526_v44 }
 0x225   :  { %v993_v15 = vsub.f32 0.0, %v977_v10  ;;  %v1124_v29 = vsub.s32 %v1121_v62, %v2508_v59  ;;  %v1177_v10 = vadd.s32 4294967200, %v2526_v44  ;;  %v1173_v17 = vsub.s32 %v1170_v6, %v2508_v59 }
 0x226   :  { %v1201_v44 = vsub.s32 %v1198_v27, %v2508_v59 }
 0x227   :  { %v1020_v20 = vmul.f32 1.442695, %v993_v15  ;;  %v1125_v16 = vrot.slane %v1678_v34, %v1124_v29  ;;  %v1180_v21 = vsub.s32 %v1177_v10, %v2508_v59 }
 0x229   :  { %1689 = vpow2.f32 %v1020_v20  ;;  %v1127_v0 = vsel %vm1126_vm4, %v1125_v16, %v1120_v41 }
 0x22a   :  { %1691 = vrcp.f32 %v1037_v22  ;;  %v1134_v61 = vsel %vm1133_vm5, %v1132_v55, %v1127_v0 }
 0x22b   :  { %1693 = vrcp.f32 %v1038_v30  ;;  %v1141_v2 = vsel %vm1140_vm6, %v1139_v63, %v1134_v61 }
 0x22c   :  { %1695 = vrcp.f32 %v1039_v33 }
 0x22d   :  { %1697 = vrcp.f32 %v1040_v35 }
 0x22e   :  { %1699 = vrcp.f32 %v1042_v43 }
 0x22f   :  { %1701 = vrcp.f32 %v1043_v47 }
 0x233   :  { %v1690_v52 = vpop.eup %1689 }
 0x234   :  { %v1041_v9 = vadd.f32 1.0, %v1690_v52  ;;  %v1692_v32 = vpop.eup %1691 }
 0x235   :  { %v1694_v3 = vpop.eup %1693  ;;  %v1146_v40 = vrot.slane %v1692_v32, %v1145_v53 }
 0x236   :  { %1703 = vrcp.f32 %v1041_v9  ;;  %v1696_v18 = vpop.eup %1695  ;;  %v1153_v14 = vrot.slane %v1694_v3, %v1152_v1 }
 0x237   :  { %1705 = vrcp.f32 %v1044_v24  ;;  %v1698_v11 = vpop.eup %1697  ;;  %v1148_v12 = vsel %vm1147_vm7, %v1146_v40, %v1141_v2  ;;  %v1160_v15 = vrot.slane %v1696_v18, %v1159_v5 }
 0x238   :  { %1707 = vrcp.f32 %v1045_v54  ;;  %v1700_v19 = vpop.eup %1699  ;;  %v1167_v20 = vrot.slane %v1698_v11, %v1166_v8  ;;  %v1155_v62 = vsel %vm1154_vm8, %v1153_v14, %v1148_v12 }
 0x239   :  { %v1702_v22 = vpop.eup %1701  ;;  %v1162_v28 = vsel %vm1161_vm9, %v1160_v15, %v1155_v62  ;;  %v1181_v36 = vrot.slane %v1700_v19, %v1180_v21 }
 0x23a   :  { %v1169_v31 = vsel %vm1168_vm10, %v1167_v20, %v1162_v28  ;;  %v1188_v56 = vrot.slane %v1702_v22, %v1187_v23 }
 0x240   :  { %v1704_v25 = vpop.eup %1703 }
 0x241   :  { %v1706_v39 = vpop.eup %1705  ;;  %v1174_v30 = vrot.slane %v1704_v25, %v1173_v17 }
 0x242   :  { %v1708_v29 = vpop.eup %1707  ;;  %v1195_v35 = vrot.slane %v1706_v39, %v1194_v26 }
 0x243   :  { %v1176_v33 = vsel %vm1175_vm11, %v1174_v30, %v1169_v31  ;;  %v1202_v57 = vrot.slane %v1708_v29, %v1201_v44 }
 0x244   :  { %v1183_v34 = vsel %vm1182_vm12, %v1181_v36, %v1176_v33 }
 0x245   :  { %v1190_v7 = vsel %vm1189_vm13, %v1188_v56, %v1183_v34 }
 0x246   :  { %v1197_v37 = vsel %vm1196_vm14, %v1195_v35, %v1190_v7 }
 0x247   :  { %v1204_v38 = vsel %vm1203_vm15, %v1202_v57, %v1197_v37 }
 0x248   :  { %1206 = vst [vmem:[#allocation3] sm:$0x1] %v1204_v38 }
 0x249   :  { %1720 = shalt.err (!%p1717_p4)
}
 0x24a   :  { %s1721_s24 = scalar_lea.hbm %s2580_s5, 16 }
 0x24b   :  { %p1722_p5 = scmp.ne.s32.totalorder %s2580_s5, %s1721_s24  ;;  %p1725_p6 = scmp.lt.u32.totalorder %s1721_s24, %s2580_s5 }
 0x24d   :  { %p1727_p7 = pnand %p1725_p6, %p1722_p5 }
 0x24f   :  { %1730 = shalt.err (!%p1727_p7)
}
 0x250   :  { %1216 = dma.vmem_to_hbm [thread:$0]  %s1214_s20, 16, %s2580_s5, [#allocation4]  }
 0x251   :  { %1731 = dma.done.wait [#allocation4], 16  }
 0x252   :  { %1732 = vsyncadd [#allocation4], 4294967280 }
 0x253   :  { %1220 = vsyncpa [#allocation4], 1 }

</bundles_post_ra>
